<compile_context>
chip_gen: v6e
topology: v6e:2x2x1
jax: 0.10.0
libtpu: 0.0.40
codegen_flags: <defaults>
</compile_context>

<pallas_src>
import functools
import math

import jax
import jax.numpy as jnp
from jax import lax
from jax.experimental import pallas as pl
from jax.experimental.pallas import tpu as pltpu

_BN_EPS = 1e-5
_ENT_EPS = 1e-10   # matches the torch module; negligible under the LSE identity


def _head_pad(W):
    # Leading zero halo of the flat scratch buffer, rounded up to 128 lanes so
    # the interior loads/stores are lane-aligned.  Must cover the deepest tap
    # reach: 3 rows + 3 columns.
    return ((3 * W + 3 + 127) // 128) * 128


# ------------------------------ Pallas kernel ------------------------------ #
def _pyrimad_kernel(x_ref, w1_ref, w2_ref, w3_ref, p1_ref, p2_ref, p3_ref,
                    out_ref, buf, *, H, W):
    cin = x_ref.shape[1]
    cout = w1_ref.shape[0]
    HW = H * W
    head = _head_pad(W)
    npad = buf.shape[1]

    # Column index of every lane of the flattened (row-major) image.
    col = lax.broadcasted_iota(jnp.int32, (1, HW), 1) % W

    def tap(nch, dy, dx):
        # (nch, HW) slab holding in[c, y+dy, x+dx]; zero outside the image.
        # Vertical out-of-range reads hit the zero halo rows; horizontal
        # row-wrap is masked off per column.
        start = head + dy * W + dx
        s = buf[0:nch, start:start + HW]
        if dx > 0:
            s = jnp.where(col < (W - dx), s, 0.0)
        elif dx < 0:
            s = jnp.where(col >= (-dx), s, 0.0)
        return s

    def write_interior(v):
        buf[0:v.shape[0], head:head + HW] = v

    def conv_relu_bn(nch, d, w_ref, p_ref):
        # One MXU GEMM: (cout, 9*nch) @ (9*nch, HW), bf16 operands, f32 acc.
        slabs = [tap(nch, d * ky, d * kx)
                 for ky in (-1, 0, 1) for kx in (-1, 0, 1)]
        kslab = jnp.concatenate(slabs, axis=0).astype(jnp.bfloat16)
        acc = jnp.dot(w_ref[...], kslab, preferred_element_type=jnp.float32)
        y = jnp.maximum(acc + p_ref[:, 0:1], 0.0)              # conv bias + ReLU
        return y * p_ref[:, 1:2] + p_ref[:, 2:3]               # folded BatchNorm

    # Re-zero only the halo strips (the interior is fully overwritten below).
    # Done every step (it is tiny) so it stays correct when the "parallel"
    # batch axis is sharded across TensorCores (a pl.when(program_id==0)
    # guard would leave the second core's scratch halo uninitialized).
    buf[:, 0:head] = jnp.zeros((buf.shape[0], head), jnp.float32)
    buf[:, head + HW:npad] = jnp.zeros((buf.shape[0], npad - head - HW),
                                       jnp.float32)

    # ---- three chained dilated 3x3 convs ---------------------------------- #
    write_interior(x_ref[0])
    x1 = conv_relu_bn(cin, 1, w1_ref, p1_ref)
    write_interior(x1)
    x2 = conv_relu_bn(cout, 2, w2_ref, p2_ref)
    write_interior(x2)
    x3 = conv_relu_bn(cout, 3, w3_ref, p3_ref)

    out = x1 + x2 + x3                                         # (cout, HW)

    # ---- per-pixel channel softmax -> normalized entropy (LSE identity) --- #
    m = jnp.max(out, axis=0, keepdims=True)                    # (1, HW)
    e = jnp.exp(out - m)
    s = jnp.sum(e, axis=0, keepdims=True)
    inv_s = 1.0 / s                                            # exact divide
    ent = jnp.log(s) - jnp.sum(e * (out - m), axis=0, keepdims=True) * inv_s
    ne = ent * (1.0 / math.log(cout))                          # (1, HW)

    # ---- sigmoid + separable / incremental 3,5,7 stride-1 max pools ------- #
    area_ = pl.reciprocal(1.0 + jnp.exp(-out), approx=True)    # all > 0
    write_interior(area_)
    rm3 = jnp.maximum(area_, jnp.maximum(tap(cout, 0, -1), tap(cout, 0, 1)))
    rm5 = jnp.maximum(rm3, jnp.maximum(tap(cout, 0, -2), tap(cout, 0, 2)))
    rm7 = jnp.maximum(rm5, jnp.maximum(tap(cout, 0, -3), tap(cout, 0, 3)))

    pool_sum = jnp.zeros((cout, HW), jnp.float32)
    for r, rm in ((1, rm3), (2, rm5), (3, rm7)):
        write_interior(rm)                                     # buf as staging
        cm = rm
        for dy in range(1, r + 1):
            cm = jnp.maximum(cm,
                             jnp.maximum(tap(cout, -dy, 0), tap(cout, dy, 0)))
        pool_sum = pool_sum + cm
    area = pool_sum * (1.0 / 3.0) * area_

    # ---- output = out * (ne + area) + out == out * (ne + area + 1) -------- #
    out_ref[0] = out * (ne + area + 1.0)                       # (cout, HW) store


# ------------------------------ glue / wrapper ------------------------------ #
def init_params(key, cin, cout):
    ks = jax.random.split(key, 9)
    s = 0.1

    def bn(k):
        kg, kb, km, kv = jax.random.split(k, 4)
        return (1.0 + 0.2 * jax.random.normal(kg, (cout,), jnp.float32),   # gamma
                0.1 * jax.random.normal(kb, (cout,), jnp.float32),          # beta
                0.1 * jax.random.normal(km, (cout,), jnp.float32),          # run mean
                jax.random.uniform(kv, (cout,), jnp.float32, 0.5, 1.5))     # run var

    g1, be1, m1, v1 = bn(ks[0])
    g2, be2, m2, v2 = bn(ks[1])
    g3, be3, m3, v3 = bn(ks[2])
    return dict(
        w1=s * jax.random.normal(ks[3], (3, 3, cin, cout), jnp.float32),   # HWIO
        b1=s * jax.random.normal(ks[4], (cout,), jnp.float32),
        w2=s * jax.random.normal(ks[5], (3, 3, cout, cout), jnp.float32),
        b2=s * jax.random.normal(ks[6], (cout,), jnp.float32),
        w3=s * jax.random.normal(ks[7], (3, 3, cout, cout), jnp.float32),
        b3=s * jax.random.normal(ks[8], (cout,), jnp.float32),
        g1=g1, be1=be1, m1=m1, v1=v1,
        g2=g2, be2=be2, m2=m2, v2=v2,
        g3=g3, be3=be3, m3=m3, v3=v3,
    )


def _vmem_limit_bytes():
    # Generation-aware VMEM budget: ~75% of physical (≈96 MiB on v5e/v6e's
    # 128 MiB, 48 MiB on v7x's 64 MiB), capped at 100 MiB; safe fallback.
    try:
        cap = int(pltpu.get_tpu_info().vmem_capacity_bytes)
        return min(cap * 3 // 4, 100 * 1024 * 1024)
    except Exception:
        return 48 * 1024 * 1024


def pyrimad_decoder_forward(x, params):
    B, Ci, H, W = x.shape
    Co = params['w1'].shape[-1]
    HW = H * W
    Cmax = max(Ci, Co)
    npad = _head_pad(W) + HW + 4 * W

    x_flat = x.reshape(B, Ci, HW).astype(jnp.float32)          # (B, C, HW) lane-dense

    # Per-conv (Cout, 9*Cin) weight slabs in bf16; K index = (tap, cin) matches
    # the in-kernel concat order.
    w1m = params['w1'].reshape(9 * Ci, Co).T.astype(jnp.bfloat16)
    w2m = params['w2'].reshape(9 * Co, Co).T.astype(jnp.bfloat16)
    w3m = params['w3'].reshape(9 * Co, Co).T.astype(jnp.bfloat16)

    def affine(b, g, be, m, v):
        scale = g / jnp.sqrt(v + _BN_EPS)
        shift = be - m * scale
        return jnp.stack([b, scale, shift], axis=1)            # (Co, 3)

    p1 = affine(params['b1'], params['g1'], params['be1'], params['m1'], params['v1'])
    p2 = affine(params['b2'], params['g2'], params['be2'], params['m2'], params['v2'])
    p3 = affine(params['b3'], params['g3'], params['be3'], params['m3'], params['v3'])

    kernel = functools.partial(_pyrimad_kernel, H=H, W=W)

    out = pl.pallas_call(
        kernel,
        out_shape=jax.ShapeDtypeStruct((B, Co, HW), jnp.float32),
        grid_spec=pltpu.PrefetchScalarGridSpec(
            num_scalar_prefetch=0,
            grid=(B,),
            in_specs=[
                pl.BlockSpec((1, Ci, HW), lambda b: (b, 0, 0)),
                pl.BlockSpec((Co, 9 * Ci), lambda b: (0, 0)),
                pl.BlockSpec((Co, 9 * Co), lambda b: (0, 0)),
                pl.BlockSpec((Co, 9 * Co), lambda b: (0, 0)),
                pl.BlockSpec((Co, 3), lambda b: (0, 0)),
                pl.BlockSpec((Co, 3), lambda b: (0, 0)),
                pl.BlockSpec((Co, 3), lambda b: (0, 0)),
            ],
            out_specs=pl.BlockSpec((1, Co, HW), lambda b: (b, 0, 0)),
            scratch_shapes=[pltpu.VMEM((Cmax, npad), jnp.float32)],
        ),
        compiler_params=pltpu.CompilerParams(
            dimension_semantics=("parallel",),
            vmem_limit_bytes=_vmem_limit_bytes()),
    )(x_flat, w1m, w2m, w3m, p1, p2, p3)

    return out.reshape(B, Co, H, W)                            # NCHW, no transpose


# --------------------------- pure-JAX reference ----------------------------- #
def ref_forward(x, params):
    def conv_bn(inp, w_hwio, b, g, be, m, v, d):
        w = jnp.transpose(w_hwio, (3, 2, 0, 1))                # OIHW
        y = lax.conv_general_dilated(
            inp, w, window_strides=(1, 1), padding=[(d, d), (d, d)],
            rhs_dilation=(d, d),
            dimension_numbers=('NCHW', 'OIHW', 'NCHW'))
        y = jax.nn.relu(y + b[None, :, None, None])
        return ((y - m[None, :, None, None])
                / jnp.sqrt(v[None, :, None, None] + _BN_EPS)
                * g[None, :, None, None] + be[None, :, None, None])

    x1 = conv_bn(x, params['w1'], params['b1'], params['g1'], params['be1'],
                 params['m1'], params['v1'], 1)
    x2 = conv_bn(x1, params['w2'], params['b2'], params['g2'], params['be2'],
                 params['m2'], params['v2'], 2)
    x3 = conv_bn(x2, params['w3'], params['b3'], params['g3'], params['be3'],
                 params['m3'], params['v3'], 3)
    out = x1 + x2 + x3
    C = out.shape[1]

    probs = jax.nn.softmax(out, axis=1)
    entropy = -jnp.sum(probs * jnp.log(probs + _ENT_EPS), axis=1)
    ne = entropy / jnp.log(jnp.float32(C))
    area_ = jax.nn.sigmoid(out)

    def maxpool(a, k):
        p = (k - 1) // 2
        return lax.reduce_window(a, -jnp.inf, lax.max, (1, 1, k, k),
                                 (1, 1, 1, 1),
                                 [(0, 0), (0, 0), (p, p), (p, p)])

    area = (maxpool(area_, 3) + maxpool(area_, 5) + maxpool(area_, 7)) / 3.0 * area_
    return out * (ne[:, None, :, :] + area) + out


# ----------------------------------- main ----------------------------------- #
if __name__ == "__main__":
    B, Cin, Cout, H, W = 2, 8, 8, 16, 16
    kx, kp = jax.random.split(jax.random.PRNGKey(0))
    x = jax.random.normal(kx, (B, Cin, H, W), jnp.float32)
    params = init_params(kp, Cin, Cout)

    out = jax.block_until_ready(pyrimad_decoder_forward(x, params))
    assert out.shape == (B, Cout, H, W), out.shape

    ref = jax.block_until_ready(ref_forward(x, params))
    max_err = float(jnp.max(jnp.abs(out - ref)))
    # Tolerance sized for bf16 MXU operands (f32 accumulation) and the EUP
    # approx reciprocal in the sigmoid, compared against an all-f32 reference.
    if not bool(jnp.allclose(out, ref, atol=5e-2, rtol=5e-2)):
        raise AssertionError(f"mismatch vs reference, max abs err = {max_err}")

    print("KERNEL_OK")
</pallas_src>

<mosaic_0001>
module attributes {stable_mosaic.version = 11 : i64} {
  func.func @_pyrimad_kernel(%arg0: i32, %arg1: memref<1x8x256xf32, #tpu.memory_space<vmem>>, %arg2: memref<8x72xbf16, #tpu.memory_space<vmem>>, %arg3: memref<8x72xbf16, #tpu.memory_space<vmem>>, %arg4: memref<8x72xbf16, #tpu.memory_space<vmem>>, %arg5: memref<8x3xf32, #tpu.memory_space<vmem>>, %arg6: memref<8x3xf32, #tpu.memory_space<vmem>>, %arg7: memref<8x3xf32, #tpu.memory_space<vmem>>, %arg8: memref<1x8x256xf32, #tpu.memory_space<vmem>>, %arg9: memref<8x448xf32, #tpu.memory_space<vmem>>) attributes {dimension_semantics = [#tpu.dimension_semantics<parallel>], iteration_bounds = array<i64: 2>, scalar_prefetch = 0 : i64, scratch_operands = 1 : i64, tpu.core_type = #tpu.core_type<tc>, window_params = [{transform_indices = @transform_0, window_bounds = array<i64: 1, 8, 256>}, {pipeline_mode = #tpu.pipeline_mode<synchronous>, transform_indices = @transform_1, window_bounds = array<i64: 8, 72>}, {pipeline_mode = #tpu.pipeline_mode<synchronous>, transform_indices = @transform_2, window_bounds = array<i64: 8, 72>}, {pipeline_mode = #tpu.pipeline_mode<synchronous>, transform_indices = @transform_3, window_bounds = array<i64: 8, 72>}, {pipeline_mode = #tpu.pipeline_mode<synchronous>, transform_indices = @transform_4, window_bounds = array<i64: 8, 3>}, {pipeline_mode = #tpu.pipeline_mode<synchronous>, transform_indices = @transform_5, window_bounds = array<i64: 8, 3>}, {pipeline_mode = #tpu.pipeline_mode<synchronous>, transform_indices = @transform_6, window_bounds = array<i64: 8, 3>}, {transform_indices = @transform_7, window_bounds = array<i64: 1, 8, 256>}]} {
    %0 = tpu.iota {dimensions = array<i32: 1>} : vector<1x256xi32>
    %c16_i32 = arith.constant 16 : i32
    %c0_i32 = arith.constant 0 : i32
    %1 = arith.cmpi eq, %c16_i32, %c0_i32 : i32
    %c1_i32 = arith.constant 1 : i32
    %2 = arith.select %1, %c1_i32, %c16_i32 : i32
    %3 = vector.broadcast %2 : i32 to vector<1x256xi32>
    %4 = arith.remsi %0, %3 : vector<1x256xi32>
    %c0_i32_0 = arith.constant 0 : i32
    %5 = vector.broadcast %c0_i32_0 : i32 to vector<1x256xi32>
    %6 = arith.cmpi ne, %4, %5 : vector<1x256xi32>
    %c0_i32_1 = arith.constant 0 : i32
    %7 = vector.broadcast %c0_i32_1 : i32 to vector<1x256xi32>
    %8 = arith.cmpi slt, %4, %7 : vector<1x256xi32>
    %c0_i32_2 = arith.constant 0 : i32
    %9 = arith.cmpi slt, %2, %c0_i32_2 : i32
    %10 = vector.broadcast %9 : i1 to vector<1x256xi1>
    %11 = vector.broadcast %10 : vector<1x256xi1> to vector<1x256xi1>
    %12 = arith.xori %8, %11 : vector<1x256xi1>
    %13 = arith.andi %12, %6 : vector<1x256xi1>
    %14 = vector.broadcast %2 : i32 to vector<1x256xi32>
    %15 = arith.addi %4, %14 : vector<1x256xi32>
    %16 = arith.select %13, %15, %4 : vector<1x256xi1>, vector<1x256xi32>
    %cst = arith.constant 0.000000e+00 : f32
    %17 = vector.broadcast %cst : f32 to vector<8x128xf32>
    %c0 = arith.constant 0 : index
    %c0_3 = arith.constant 0 : index
    %18 = vector.load %arg9[%c0, %c0_3] : memref<8x448xf32, #tpu.memory_space<vmem>>, vector<8x128xf32>
    tpu.vector_store %arg9[%c0, %c0_3], %17 {strides = array<i32>} : memref<8x448xf32, #tpu.memory_space<vmem>>, vector<8x128xf32>,
    %cst_4 = arith.constant 0.000000e+00 : f32
    %19 = vector.broadcast %cst_4 : f32 to vector<8x64xf32>
    %c0_5 = arith.constant 0 : index
    %c384 = arith.constant 384 : index
    %20 = vector.load %arg9[%c0_5, %c384] : memref<8x448xf32, #tpu.memory_space<vmem>>, vector<8x64xf32>
    tpu.vector_store %arg9[%c0_5, %c384], %19 {strides = array<i32>} : memref<8x448xf32, #tpu.memory_space<vmem>>, vector<8x64xf32>,
    %c0_6 = arith.constant 0 : index
    %c0_7 = arith.constant 0 : index
    %c0_8 = arith.constant 0 : index
    %21 = vector.load %arg1[%c0_6, %c0_7, %c0_8] : memref<1x8x256xf32, #tpu.memory_space<vmem>>, vector<1x8x256xf32>
    %22 = vector.shape_cast %21 : vector<1x8x256xf32> to vector<8x256xf32>
    %c0_9 = arith.constant 0 : index
    %c128 = arith.constant 128 : index
    %23 = vector.load %arg9[%c0_9, %c128] : memref<8x448xf32, #tpu.memory_space<vmem>>, vector<8x256xf32>
    tpu.vector_store %arg9[%c0_9, %c128], %22 {strides = array<i32>} : memref<8x448xf32, #tpu.memory_space<vmem>>, vector<8x256xf32>,
    %c0_10 = arith.constant 0 : index
    %c111 = arith.constant 111 : index
    %24 = vector.load %arg9[%c0_10, %c111] : memref<8x448xf32, #tpu.memory_space<vmem>>, vector<8x256xf32>
    %c1_i32_11 = arith.constant 1 : i32
    %25 = vector.broadcast %c1_i32_11 : i32 to vector<1x256xi32>
    %26 = arith.cmpi sge, %16, %25 : vector<1x256xi32>
    %cst_12 = arith.constant 0.000000e+00 : f32
    %27 = vector.shape_cast %26 : vector<1x256xi1> to vector<1x256xi1>
    %28 = vector.broadcast %27 : vector<1x256xi1> to vector<8x256xi1>
    %29 = vector.broadcast %cst_12 : f32 to vector<8x256xf32>
    %30 = arith.select %28, %24, %29 : vector<8x256xi1>, vector<8x256xf32>
    %c0_13 = arith.constant 0 : index
    %c112 = arith.constant 112 : index
    %31 = vector.load %arg9[%c0_13, %c112] : memref<8x448xf32, #tpu.memory_space<vmem>>, vector<8x256xf32>
    %c0_14 = arith.constant 0 : index
    %c113 = arith.constant 113 : index
    %32 = vector.load %arg9[%c0_14, %c113] : memref<8x448xf32, #tpu.memory_space<vmem>>, vector<8x256xf32>
    %c15_i32 = arith.constant 15 : i32
    %33 = vector.broadcast %c15_i32 : i32 to vector<1x256xi32>
    %34 = arith.cmpi slt, %16, %33 : vector<1x256xi32>
    %cst_15 = arith.constant 0.000000e+00 : f32
    %35 = vector.shape_cast %34 : vector<1x256xi1> to vector<1x256xi1>
    %36 = vector.broadcast %35 : vector<1x256xi1> to vector<8x256xi1>
    %37 = vector.broadcast %cst_15 : f32 to vector<8x256xf32>
    %38 = arith.select %36, %32, %37 : vector<8x256xi1>, vector<8x256xf32>
    %c0_16 = arith.constant 0 : index
    %c127 = arith.constant 127 : index
    %39 = vector.load %arg9[%c0_16, %c127] : memref<8x448xf32, #tpu.memory_space<vmem>>, vector<8x256xf32>
    %c1_i32_17 = arith.constant 1 : i32
    %40 = vector.broadcast %c1_i32_17 : i32 to vector<1x256xi32>
    %41 = arith.cmpi sge, %16, %40 : vector<1x256xi32>
    %cst_18 = arith.constant 0.000000e+00 : f32
    %42 = vector.shape_cast %41 : vector<1x256xi1> to vector<1x256xi1>
    %43 = vector.broadcast %42 : vector<1x256xi1> to vector<8x256xi1>
    %44 = vector.broadcast %cst_18 : f32 to vector<8x256xf32>
    %45 = arith.select %43, %39, %44 : vector<8x256xi1>, vector<8x256xf32>
    %c0_19 = arith.constant 0 : index
    %c128_20 = arith.constant 128 : index
    %46 = vector.load %arg9[%c0_19, %c128_20] : memref<8x448xf32, #tpu.memory_space<vmem>>, vector<8x256xf32>
    %c0_21 = arith.constant 0 : index
    %c129 = arith.constant 129 : index
    %47 = vector.load %arg9[%c0_21, %c129] : memref<8x448xf32, #tpu.memory_space<vmem>>, vector<8x256xf32>
    %c15_i32_22 = arith.constant 15 : i32
    %48 = vector.broadcast %c15_i32_22 : i32 to vector<1x256xi32>
    %49 = arith.cmpi slt, %16, %48 : vector<1x256xi32>
    %cst_23 = arith.constant 0.000000e+00 : f32
    %50 = vector.shape_cast %49 : vector<1x256xi1> to vector<1x256xi1>
    %51 = vector.broadcast %50 : vector<1x256xi1> to vector<8x256xi1>
    %52 = vector.broadcast %cst_23 : f32 to vector<8x256xf32>
    %53 = arith.select %51, %47, %52 : vector<8x256xi1>, vector<8x256xf32>
    %c0_24 = arith.constant 0 : index
    %c143 = arith.constant 143 : index
    %54 = vector.load %arg9[%c0_24, %c143] : memref<8x448xf32, #tpu.memory_space<vmem>>, vector<8x256xf32>
    %c1_i32_25 = arith.constant 1 : i32
    %55 = vector.broadcast %c1_i32_25 : i32 to vector<1x256xi32>
    %56 = arith.cmpi sge, %16, %55 : vector<1x256xi32>
    %cst_26 = arith.constant 0.000000e+00 : f32
    %57 = vector.shape_cast %56 : vector<1x256xi1> to vector<1x256xi1>
    %58 = vector.broadcast %57 : vector<1x256xi1> to vector<8x256xi1>
    %59 = vector.broadcast %cst_26 : f32 to vector<8x256xf32>
    %60 = arith.select %58, %54, %59 : vector<8x256xi1>, vector<8x256xf32>
    %c0_27 = arith.constant 0 : index
    %c144 = arith.constant 144 : index
    %61 = vector.load %arg9[%c0_27, %c144] : memref<8x448xf32, #tpu.memory_space<vmem>>, vector<8x256xf32>
    %c0_28 = arith.constant 0 : index
    %c145 = arith.constant 145 : index
    %62 = vector.load %arg9[%c0_28, %c145] : memref<8x448xf32, #tpu.memory_space<vmem>>, vector<8x256xf32>
    %c15_i32_29 = arith.constant 15 : i32
    %63 = vector.broadcast %c15_i32_29 : i32 to vector<1x256xi32>
    %64 = arith.cmpi slt, %16, %63 : vector<1x256xi32>
    %cst_30 = arith.constant 0.000000e+00 : f32
    %65 = vector.shape_cast %64 : vector<1x256xi1> to vector<1x256xi1>
    %66 = vector.broadcast %65 : vector<1x256xi1> to vector<8x256xi1>
    %67 = vector.broadcast %cst_30 : f32 to vector<8x256xf32>
    %68 = arith.select %66, %62, %67 : vector<8x256xi1>, vector<8x256xf32>
    %69 = tpu.concatenate %30, %31, %38, %45, %46, %53, %60, %61, %68 in 0 : vector<8x256xf32>, vector<8x256xf32>, vector<8x256xf32>, vector<8x256xf32>, vector<8x256xf32>, vector<8x256xf32>, vector<8x256xf32>, vector<8x256xf32>, vector<8x256xf32> -> vector<72x256xf32>
    %70 = arith.truncf %69 : vector<72x256xf32> to vector<72x256xbf16>
    %c0_31 = arith.constant 0 : index
    %c0_32 = arith.constant 0 : index
    %71 = vector.load %arg2[%c0_31, %c0_32] : memref<8x72xbf16, #tpu.memory_space<vmem>>, vector<8x72xbf16>
    %cst_33 = arith.constant dense<0.000000e+00> : vector<8x256xf32>
    %72 = tpu.matmul %71, %70, %cst_33 {dimension_numbers = #tpu.dot_dimension_numbers<[1], [0], [0], [1], [0, 0, 1, 1], [], []>} : vector<8x72xbf16>, vector<72x256xbf16>, vector<8x256xf32> -> vector<8x256xf32>
    %c0_34 = arith.constant 0 : index
    %c0_35 = arith.constant 0 : index
    %73 = vector.load %arg5[%c0_34, %c0_35] : memref<8x3xf32, #tpu.memory_space<vmem>>, vector<8x1xf32>
    %74 = vector.broadcast %73 : vector<8x1xf32> to vector<8x256xf32>
    %75 = arith.addf %72, %74 : vector<8x256xf32>
    %cst_36 = arith.constant 0.000000e+00 : f32
    %76 = vector.broadcast %cst_36 : f32 to vector<8x256xf32>
    %77 = arith.maximumf %75, %76 : vector<8x256xf32>
    %c0_37 = arith.constant 0 : index
    %c1 = arith.constant 1 : index
    %78 = vector.load %arg5[%c0_37, %c1] : memref<8x3xf32, #tpu.memory_space<vmem>>, vector<8x1xf32>
    %79 = vector.broadcast %78 : vector<8x1xf32> to vector<8x256xf32>
    %80 = arith.mulf %77, %79 : vector<8x256xf32>
    %c0_38 = arith.constant 0 : index
    %c2 = arith.constant 2 : index
    %81 = vector.load %arg5[%c0_38, %c2] : memref<8x3xf32, #tpu.memory_space<vmem>>, vector<8x1xf32>
    %82 = vector.broadcast %81 : vector<8x1xf32> to vector<8x256xf32>
    %83 = arith.addf %80, %82 : vector<8x256xf32>
    %c0_39 = arith.constant 0 : index
    %c128_40 = arith.constant 128 : index
    %84 = vector.load %arg9[%c0_39, %c128_40] : memref<8x448xf32, #tpu.memory_space<vmem>>, vector<8x256xf32>
    tpu.vector_store %arg9[%c0_39, %c128_40], %83 {strides = array<i32>} : memref<8x448xf32, #tpu.memory_space<vmem>>, vector<8x256xf32>,
    %c0_41 = arith.constant 0 : index
    %c94 = arith.constant 94 : index
    %85 = vector.load %arg9[%c0_41, %c94] : memref<8x448xf32, #tpu.memory_space<vmem>>, vector<8x256xf32>
    %c2_i32 = arith.constant 2 : i32
    %86 = vector.broadcast %c2_i32 : i32 to vector<1x256xi32>
    %87 = arith.cmpi sge, %16, %86 : vector<1x256xi32>
    %cst_42 = arith.constant 0.000000e+00 : f32
    %88 = vector.shape_cast %87 : vector<1x256xi1> to vector<1x256xi1>
    %89 = vector.broadcast %88 : vector<1x256xi1> to vector<8x256xi1>
    %90 = vector.broadcast %cst_42 : f32 to vector<8x256xf32>
    %91 = arith.select %89, %85, %90 : vector<8x256xi1>, vector<8x256xf32>
    %c0_43 = arith.constant 0 : index
    %c96 = arith.constant 96 : index
    %92 = vector.load %arg9[%c0_43, %c96] : memref<8x448xf32, #tpu.memory_space<vmem>>, vector<8x256xf32>
    %c0_44 = arith.constant 0 : index
    %c98 = arith.constant 98 : index
    %93 = vector.load %arg9[%c0_44, %c98] : memref<8x448xf32, #tpu.memory_space<vmem>>, vector<8x256xf32>
    %c14_i32 = arith.constant 14 : i32
    %94 = vector.broadcast %c14_i32 : i32 to vector<1x256xi32>
    %95 = arith.cmpi slt, %16, %94 : vector<1x256xi32>
    %cst_45 = arith.constant 0.000000e+00 : f32
    %96 = vector.shape_cast %95 : vector<1x256xi1> to vector<1x256xi1>
    %97 = vector.broadcast %96 : vector<1x256xi1> to vector<8x256xi1>
    %98 = vector.broadcast %cst_45 : f32 to vector<8x256xf32>
    %99 = arith.select %97, %93, %98 : vector<8x256xi1>, vector<8x256xf32>
    %c0_46 = arith.constant 0 : index
    %c126 = arith.constant 126 : index
    %100 = vector.load %arg9[%c0_46, %c126] : memref<8x448xf32, #tpu.memory_space<vmem>>, vector<8x256xf32>
    %c2_i32_47 = arith.constant 2 : i32
    %101 = vector.broadcast %c2_i32_47 : i32 to vector<1x256xi32>
    %102 = arith.cmpi sge, %16, %101 : vector<1x256xi32>
    %cst_48 = arith.constant 0.000000e+00 : f32
    %103 = vector.shape_cast %102 : vector<1x256xi1> to vector<1x256xi1>
    %104 = vector.broadcast %103 : vector<1x256xi1> to vector<8x256xi1>
    %105 = vector.broadcast %cst_48 : f32 to vector<8x256xf32>
    %106 = arith.select %104, %100, %105 : vector<8x256xi1>, vector<8x256xf32>
    %c0_49 = arith.constant 0 : index
    %c128_50 = arith.constant 128 : index
    %107 = vector.load %arg9[%c0_49, %c128_50] : memref<8x448xf32, #tpu.memory_space<vmem>>, vector<8x256xf32>
    %c0_51 = arith.constant 0 : index
    %c130 = arith.constant 130 : index
    %108 = vector.load %arg9[%c0_51, %c130] : memref<8x448xf32, #tpu.memory_space<vmem>>, vector<8x256xf32>
    %c14_i32_52 = arith.constant 14 : i32
    %109 = vector.broadcast %c14_i32_52 : i32 to vector<1x256xi32>
    %110 = arith.cmpi slt, %16, %109 : vector<1x256xi32>
    %cst_53 = arith.constant 0.000000e+00 : f32
    %111 = vector.shape_cast %110 : vector<1x256xi1> to vector<1x256xi1>
    %112 = vector.broadcast %111 : vector<1x256xi1> to vector<8x256xi1>
    %113 = vector.broadcast %cst_53 : f32 to vector<8x256xf32>
    %114 = arith.select %112, %108, %113 : vector<8x256xi1>, vector<8x256xf32>
    %c0_54 = arith.constant 0 : index
    %c158 = arith.constant 158 : index
    %115 = vector.load %arg9[%c0_54, %c158] : memref<8x448xf32, #tpu.memory_space<vmem>>, vector<8x256xf32>
    %c2_i32_55 = arith.constant 2 : i32
    %116 = vector.broadcast %c2_i32_55 : i32 to vector<1x256xi32>
    %117 = arith.cmpi sge, %16, %116 : vector<1x256xi32>
    %cst_56 = arith.constant 0.000000e+00 : f32
    %118 = vector.shape_cast %117 : vector<1x256xi1> to vector<1x256xi1>
    %119 = vector.broadcast %118 : vector<1x256xi1> to vector<8x256xi1>
    %120 = vector.broadcast %cst_56 : f32 to vector<8x256xf32>
    %121 = arith.select %119, %115, %120 : vector<8x256xi1>, vector<8x256xf32>
    %c0_57 = arith.constant 0 : index
    %c160 = arith.constant 160 : index
    %122 = vector.load %arg9[%c0_57, %c160] : memref<8x448xf32, #tpu.memory_space<vmem>>, vector<8x256xf32>
    %c0_58 = arith.constant 0 : index
    %c162 = arith.constant 162 : index
    %123 = vector.load %arg9[%c0_58, %c162] : memref<8x448xf32, #tpu.memory_space<vmem>>, vector<8x256xf32>
    %c14_i32_59 = arith.constant 14 : i32
    %124 = vector.broadcast %c14_i32_59 : i32 to vector<1x256xi32>
    %125 = arith.cmpi slt, %16, %124 : vector<1x256xi32>
    %cst_60 = arith.constant 0.000000e+00 : f32
    %126 = vector.shape_cast %125 : vector<1x256xi1> to vector<1x256xi1>
    %127 = vector.broadcast %126 : vector<1x256xi1> to vector<8x256xi1>
    %128 = vector.broadcast %cst_60 : f32 to vector<8x256xf32>
    %129 = arith.select %127, %123, %128 : vector<8x256xi1>, vector<8x256xf32>
    %130 = tpu.concatenate %91, %92, %99, %106, %107, %114, %121, %122, %129 in 0 : vector<8x256xf32>, vector<8x256xf32>, vector<8x256xf32>, vector<8x256xf32>, vector<8x256xf32>, vector<8x256xf32>, vector<8x256xf32>, vector<8x256xf32>, vector<8x256xf32> -> vector<72x256xf32>
    %131 = arith.truncf %130 : vector<72x256xf32> to vector<72x256xbf16>
    %c0_61 = arith.constant 0 : index
    %c0_62 = arith.constant 0 : index
    %132 = vector.load %arg3[%c0_61, %c0_62] : memref<8x72xbf16, #tpu.memory_space<vmem>>, vector<8x72xbf16>
    %cst_63 = arith.constant dense<0.000000e+00> : vector<8x256xf32>
    %133 = tpu.matmul %132, %131, %cst_63 {dimension_numbers = #tpu.dot_dimension_numbers<[1], [0], [0], [1], [0, 0, 1, 1], [], []>} : vector<8x72xbf16>, vector<72x256xbf16>, vector<8x256xf32> -> vector<8x256xf32>
    %c0_64 = arith.constant 0 : index
    %c0_65 = arith.constant 0 : index
    %134 = vector.load %arg6[%c0_64, %c0_65] : memref<8x3xf32, #tpu.memory_space<vmem>>, vector<8x1xf32>
    %135 = vector.broadcast %134 : vector<8x1xf32> to vector<8x256xf32>
    %136 = arith.addf %133, %135 : vector<8x256xf32>
    %cst_66 = arith.constant 0.000000e+00 : f32
    %137 = vector.broadcast %cst_66 : f32 to vector<8x256xf32>
    %138 = arith.maximumf %136, %137 : vector<8x256xf32>
    %c0_67 = arith.constant 0 : index
    %c1_68 = arith.constant 1 : index
    %139 = vector.load %arg6[%c0_67, %c1_68] : memref<8x3xf32, #tpu.memory_space<vmem>>, vector<8x1xf32>
    %140 = vector.broadcast %139 : vector<8x1xf32> to vector<8x256xf32>
    %141 = arith.mulf %138, %140 : vector<8x256xf32>
    %c0_69 = arith.constant 0 : index
    %c2_70 = arith.constant 2 : index
    %142 = vector.load %arg6[%c0_69, %c2_70] : memref<8x3xf32, #tpu.memory_space<vmem>>, vector<8x1xf32>
    %143 = vector.broadcast %142 : vector<8x1xf32> to vector<8x256xf32>
    %144 = arith.addf %141, %143 : vector<8x256xf32>
    %c0_71 = arith.constant 0 : index
    %c128_72 = arith.constant 128 : index
    %145 = vector.load %arg9[%c0_71, %c128_72] : memref<8x448xf32, #tpu.memory_space<vmem>>, vector<8x256xf32>
    tpu.vector_store %arg9[%c0_71, %c128_72], %144 {strides = array<i32>} : memref<8x448xf32, #tpu.memory_space<vmem>>, vector<8x256xf32>,
    %c0_73 = arith.constant 0 : index
    %c77 = arith.constant 77 : index
    %146 = vector.load %arg9[%c0_73, %c77] : memref<8x448xf32, #tpu.memory_space<vmem>>, vector<8x256xf32>
    %c3_i32 = arith.constant 3 : i32
    %147 = vector.broadcast %c3_i32 : i32 to vector<1x256xi32>
    %148 = arith.cmpi sge, %16, %147 : vector<1x256xi32>
    %cst_74 = arith.constant 0.000000e+00 : f32
    %149 = vector.shape_cast %148 : vector<1x256xi1> to vector<1x256xi1>
    %150 = vector.broadcast %149 : vector<1x256xi1> to vector<8x256xi1>
    %151 = vector.broadcast %cst_74 : f32 to vector<8x256xf32>
    %152 = arith.select %150, %146, %151 : vector<8x256xi1>, vector<8x256xf32>
    %c0_75 = arith.constant 0 : index
    %c80 = arith.constant 80 : index
    %153 = vector.load %arg9[%c0_75, %c80] : memref<8x448xf32, #tpu.memory_space<vmem>>, vector<8x256xf32>
    %c0_76 = arith.constant 0 : index
    %c83 = arith.constant 83 : index
    %154 = vector.load %arg9[%c0_76, %c83] : memref<8x448xf32, #tpu.memory_space<vmem>>, vector<8x256xf32>
    %c13_i32 = arith.constant 13 : i32
    %155 = vector.broadcast %c13_i32 : i32 to vector<1x256xi32>
    %156 = arith.cmpi slt, %16, %155 : vector<1x256xi32>
    %cst_77 = arith.constant 0.000000e+00 : f32
    %157 = vector.shape_cast %156 : vector<1x256xi1> to vector<1x256xi1>
    %158 = vector.broadcast %157 : vector<1x256xi1> to vector<8x256xi1>
    %159 = vector.broadcast %cst_77 : f32 to vector<8x256xf32>
    %160 = arith.select %158, %154, %159 : vector<8x256xi1>, vector<8x256xf32>
    %c0_78 = arith.constant 0 : index
    %c125 = arith.constant 125 : index
    %161 = vector.load %arg9[%c0_78, %c125] : memref<8x448xf32, #tpu.memory_space<vmem>>, vector<8x256xf32>
    %c3_i32_79 = arith.constant 3 : i32
    %162 = vector.broadcast %c3_i32_79 : i32 to vector<1x256xi32>
    %163 = arith.cmpi sge, %16, %162 : vector<1x256xi32>
    %cst_80 = arith.constant 0.000000e+00 : f32
    %164 = vector.shape_cast %163 : vector<1x256xi1> to vector<1x256xi1>
    %165 = vector.broadcast %164 : vector<1x256xi1> to vector<8x256xi1>
    %166 = vector.broadcast %cst_80 : f32 to vector<8x256xf32>
    %167 = arith.select %165, %161, %166 : vector<8x256xi1>, vector<8x256xf32>
    %c0_81 = arith.constant 0 : index
    %c128_82 = arith.constant 128 : index
    %168 = vector.load %arg9[%c0_81, %c128_82] : memref<8x448xf32, #tpu.memory_space<vmem>>, vector<8x256xf32>
    %c0_83 = arith.constant 0 : index
    %c131 = arith.constant 131 : index
    %169 = vector.load %arg9[%c0_83, %c131] : memref<8x448xf32, #tpu.memory_space<vmem>>, vector<8x256xf32>
    %c13_i32_84 = arith.constant 13 : i32
    %170 = vector.broadcast %c13_i32_84 : i32 to vector<1x256xi32>
    %171 = arith.cmpi slt, %16, %170 : vector<1x256xi32>
    %cst_85 = arith.constant 0.000000e+00 : f32
    %172 = vector.shape_cast %171 : vector<1x256xi1> to vector<1x256xi1>
    %173 = vector.broadcast %172 : vector<1x256xi1> to vector<8x256xi1>
    %174 = vector.broadcast %cst_85 : f32 to vector<8x256xf32>
    %175 = arith.select %173, %169, %174 : vector<8x256xi1>, vector<8x256xf32>
    %c0_86 = arith.constant 0 : index
    %c173 = arith.constant 173 : index
    %176 = vector.load %arg9[%c0_86, %c173] : memref<8x448xf32, #tpu.memory_space<vmem>>, vector<8x256xf32>
    %c3_i32_87 = arith.constant 3 : i32
    %177 = vector.broadcast %c3_i32_87 : i32 to vector<1x256xi32>
    %178 = arith.cmpi sge, %16, %177 : vector<1x256xi32>
    %cst_88 = arith.constant 0.000000e+00 : f32
    %179 = vector.shape_cast %178 : vector<1x256xi1> to vector<1x256xi1>
    %180 = vector.broadcast %179 : vector<1x256xi1> to vector<8x256xi1>
    %181 = vector.broadcast %cst_88 : f32 to vector<8x256xf32>
    %182 = arith.select %180, %176, %181 : vector<8x256xi1>, vector<8x256xf32>
    %c0_89 = arith.constant 0 : index
    %c176 = arith.constant 176 : index
    %183 = vector.load %arg9[%c0_89, %c176] : memref<8x448xf32, #tpu.memory_space<vmem>>, vector<8x256xf32>
    %c0_90 = arith.constant 0 : index
    %c179 = arith.constant 179 : index
    %184 = vector.load %arg9[%c0_90, %c179] : memref<8x448xf32, #tpu.memory_space<vmem>>, vector<8x256xf32>
    %c13_i32_91 = arith.constant 13 : i32
    %185 = vector.broadcast %c13_i32_91 : i32 to vector<1x256xi32>
    %186 = arith.cmpi slt, %16, %185 : vector<1x256xi32>
    %cst_92 = arith.constant 0.000000e+00 : f32
    %187 = vector.shape_cast %186 : vector<1x256xi1> to vector<1x256xi1>
    %188 = vector.broadcast %187 : vector<1x256xi1> to vector<8x256xi1>
    %189 = vector.broadcast %cst_92 : f32 to vector<8x256xf32>
    %190 = arith.select %188, %184, %189 : vector<8x256xi1>, vector<8x256xf32>
    %191 = tpu.concatenate %152, %153, %160, %167, %168, %175, %182, %183, %190 in 0 : vector<8x256xf32>, vector<8x256xf32>, vector<8x256xf32>, vector<8x256xf32>, vector<8x256xf32>, vector<8x256xf32>, vector<8x256xf32>, vector<8x256xf32>, vector<8x256xf32> -> vector<72x256xf32>
    %192 = arith.truncf %191 : vector<72x256xf32> to vector<72x256xbf16>
    %c0_93 = arith.constant 0 : index
    %c0_94 = arith.constant 0 : index
    %193 = vector.load %arg4[%c0_93, %c0_94] : memref<8x72xbf16, #tpu.memory_space<vmem>>, vector<8x72xbf16>
    %cst_95 = arith.constant dense<0.000000e+00> : vector<8x256xf32>
    %194 = tpu.matmul %193, %192, %cst_95 {dimension_numbers = #tpu.dot_dimension_numbers<[1], [0], [0], [1], [0, 0, 1, 1], [], []>} : vector<8x72xbf16>, vector<72x256xbf16>, vector<8x256xf32> -> vector<8x256xf32>
    %c0_96 = arith.constant 0 : index
    %c0_97 = arith.constant 0 : index
    %195 = vector.load %arg7[%c0_96, %c0_97] : memref<8x3xf32, #tpu.memory_space<vmem>>, vector<8x1xf32>
    %196 = vector.broadcast %195 : vector<8x1xf32> to vector<8x256xf32>
    %197 = arith.addf %194, %196 : vector<8x256xf32>
    %cst_98 = arith.constant 0.000000e+00 : f32
    %198 = vector.broadcast %cst_98 : f32 to vector<8x256xf32>
    %199 = arith.maximumf %197, %198 : vector<8x256xf32>
    %c0_99 = arith.constant 0 : index
    %c1_100 = arith.constant 1 : index
    %200 = vector.load %arg7[%c0_99, %c1_100] : memref<8x3xf32, #tpu.memory_space<vmem>>, vector<8x1xf32>
    %201 = vector.broadcast %200 : vector<8x1xf32> to vector<8x256xf32>
    %202 = arith.mulf %199, %201 : vector<8x256xf32>
    %c0_101 = arith.constant 0 : index
    %c2_102 = arith.constant 2 : index
    %203 = vector.load %arg7[%c0_101, %c2_102] : memref<8x3xf32, #tpu.memory_space<vmem>>, vector<8x1xf32>
    %204 = vector.broadcast %203 : vector<8x1xf32> to vector<8x256xf32>
    %205 = arith.addf %202, %204 : vector<8x256xf32>
    %206 = arith.addf %83, %144 : vector<8x256xf32>
    %207 = arith.addf %206, %205 : vector<8x256xf32>
    %cst_103 = arith.constant dense<0xFF800000> : vector<256xf32>
    %208 = vector.multi_reduction <maximumf>, %207, %cst_103 [0] : vector<8x256xf32> to vector<256xf32>
    %209 = vector.shape_cast %208 : vector<256xf32> to vector<1x256xf32>
    %210 = vector.broadcast %209 : vector<1x256xf32> to vector<8x256xf32>
    %211 = arith.subf %207, %210 : vector<8x256xf32>
    %212 = math.exp %211 : vector<8x256xf32>
    %cst_104 = arith.constant dense<0.000000e+00> : vector<256xf32>
    %213 = vector.multi_reduction <add>, %212, %cst_104 [0] : vector<8x256xf32> to vector<256xf32>
    %214 = vector.shape_cast %213 : vector<256xf32> to vector<1x256xf32>
    %cst_105 = arith.constant 1.000000e+00 : f32
    %215 = vector.broadcast %cst_105 : f32 to vector<1x256xf32>
    %216 = arith.divf %215, %214 : vector<1x256xf32>
    %217 = math.log %214 : vector<1x256xf32>
    %218 = vector.broadcast %209 : vector<1x256xf32> to vector<8x256xf32>
    %219 = arith.subf %207, %218 : vector<8x256xf32>
    %220 = arith.mulf %212, %219 : vector<8x256xf32>
    %cst_106 = arith.constant dense<0.000000e+00> : vector<256xf32>
    %221 = vector.multi_reduction <add>, %220, %cst_106 [0] : vector<8x256xf32> to vector<256xf32>
    %222 = vector.shape_cast %221 : vector<256xf32> to vector<1x256xf32>
    %223 = arith.mulf %222, %216 : vector<1x256xf32>
    %224 = arith.subf %217, %223 : vector<1x256xf32>
    %cst_107 = arith.constant 0.48089835 : f32
    %225 = vector.broadcast %cst_107 : f32 to vector<1x256xf32>
    %226 = arith.mulf %224, %225 : vector<1x256xf32>
    %cst_108 = arith.constant 0.000000e+00 : f32
    %227 = vector.broadcast %cst_108 : f32 to vector<8x256xf32>
    %228 = arith.subf %227, %207 : vector<8x256xf32>
    %229 = math.exp %228 : vector<8x256xf32>
    %cst_109 = arith.constant 1.000000e+00 : f32
    %230 = vector.broadcast %cst_109 : f32 to vector<8x256xf32>
    %231 = arith.addf %230, %229 : vector<8x256xf32>
    %232 = tpu.reciprocal %231 {approx = true} : vector<8x256xf32> -> vector<8x256xf32>
    %c0_110 = arith.constant 0 : index
    %c128_111 = arith.constant 128 : index
    %233 = vector.load %arg9[%c0_110, %c128_111] : memref<8x448xf32, #tpu.memory_space<vmem>>, vector<8x256xf32>
    tpu.vector_store %arg9[%c0_110, %c128_111], %232 {strides = array<i32>} : memref<8x448xf32, #tpu.memory_space<vmem>>, vector<8x256xf32>,
    %c0_112 = arith.constant 0 : index
    %c127_113 = arith.constant 127 : index
    %234 = vector.load %arg9[%c0_112, %c127_113] : memref<8x448xf32, #tpu.memory_space<vmem>>, vector<8x256xf32>
    %c1_i32_114 = arith.constant 1 : i32
    %235 = vector.broadcast %c1_i32_114 : i32 to vector<1x256xi32>
    %236 = arith.cmpi sge, %16, %235 : vector<1x256xi32>
    %cst_115 = arith.constant 0.000000e+00 : f32
    %237 = vector.shape_cast %236 : vector<1x256xi1> to vector<1x256xi1>
    %238 = vector.broadcast %237 : vector<1x256xi1> to vector<8x256xi1>
    %239 = vector.broadcast %cst_115 : f32 to vector<8x256xf32>
    %240 = arith.select %238, %234, %239 : vector<8x256xi1>, vector<8x256xf32>
    %c0_116 = arith.constant 0 : index
    %c129_117 = arith.constant 129 : index
    %241 = vector.load %arg9[%c0_116, %c129_117] : memref<8x448xf32, #tpu.memory_space<vmem>>, vector<8x256xf32>
    %c15_i32_118 = arith.constant 15 : i32
    %242 = vector.broadcast %c15_i32_118 : i32 to vector<1x256xi32>
    %243 = arith.cmpi slt, %16, %242 : vector<1x256xi32>
    %cst_119 = arith.constant 0.000000e+00 : f32
    %244 = vector.shape_cast %243 : vector<1x256xi1> to vector<1x256xi1>
    %245 = vector.broadcast %244 : vector<1x256xi1> to vector<8x256xi1>
    %246 = vector.broadcast %cst_119 : f32 to vector<8x256xf32>
    %247 = arith.select %245, %241, %246 : vector<8x256xi1>, vector<8x256xf32>
    %248 = arith.maximumf %240, %247 : vector<8x256xf32>
    %249 = arith.maximumf %232, %248 : vector<8x256xf32>
    %c0_120 = arith.constant 0 : index
    %c126_121 = arith.constant 126 : index
    %250 = vector.load %arg9[%c0_120, %c126_121] : memref<8x448xf32, #tpu.memory_space<vmem>>, vector<8x256xf32>
    %c2_i32_122 = arith.constant 2 : i32
    %251 = vector.broadcast %c2_i32_122 : i32 to vector<1x256xi32>
    %252 = arith.cmpi sge, %16, %251 : vector<1x256xi32>
    %cst_123 = arith.constant 0.000000e+00 : f32
    %253 = vector.shape_cast %252 : vector<1x256xi1> to vector<1x256xi1>
    %254 = vector.broadcast %253 : vector<1x256xi1> to vector<8x256xi1>
    %255 = vector.broadcast %cst_123 : f32 to vector<8x256xf32>
    %256 = arith.select %254, %250, %255 : vector<8x256xi1>, vector<8x256xf32>
    %c0_124 = arith.constant 0 : index
    %c130_125 = arith.constant 130 : index
    %257 = vector.load %arg9[%c0_124, %c130_125] : memref<8x448xf32, #tpu.memory_space<vmem>>, vector<8x256xf32>
    %c14_i32_126 = arith.constant 14 : i32
    %258 = vector.broadcast %c14_i32_126 : i32 to vector<1x256xi32>
    %259 = arith.cmpi slt, %16, %258 : vector<1x256xi32>
    %cst_127 = arith.constant 0.000000e+00 : f32
    %260 = vector.shape_cast %259 : vector<1x256xi1> to vector<1x256xi1>
    %261 = vector.broadcast %260 : vector<1x256xi1> to vector<8x256xi1>
    %262 = vector.broadcast %cst_127 : f32 to vector<8x256xf32>
    %263 = arith.select %261, %257, %262 : vector<8x256xi1>, vector<8x256xf32>
    %264 = arith.maximumf %256, %263 : vector<8x256xf32>
    %265 = arith.maximumf %249, %264 : vector<8x256xf32>
    %c0_128 = arith.constant 0 : index
    %c125_129 = arith.constant 125 : index
    %266 = vector.load %arg9[%c0_128, %c125_129] : memref<8x448xf32, #tpu.memory_space<vmem>>, vector<8x256xf32>
    %c3_i32_130 = arith.constant 3 : i32
    %267 = vector.broadcast %c3_i32_130 : i32 to vector<1x256xi32>
    %268 = arith.cmpi sge, %16, %267 : vector<1x256xi32>
    %cst_131 = arith.constant 0.000000e+00 : f32
    %269 = vector.shape_cast %268 : vector<1x256xi1> to vector<1x256xi1>
    %270 = vector.broadcast %269 : vector<1x256xi1> to vector<8x256xi1>
    %271 = vector.broadcast %cst_131 : f32 to vector<8x256xf32>
    %272 = arith.select %270, %266, %271 : vector<8x256xi1>, vector<8x256xf32>
    %c0_132 = arith.constant 0 : index
    %c131_133 = arith.constant 131 : index
    %273 = vector.load %arg9[%c0_132, %c131_133] : memref<8x448xf32, #tpu.memory_space<vmem>>, vector<8x256xf32>
    %c13_i32_134 = arith.constant 13 : i32
    %274 = vector.broadcast %c13_i32_134 : i32 to vector<1x256xi32>
    %275 = arith.cmpi slt, %16, %274 : vector<1x256xi32>
    %cst_135 = arith.constant 0.000000e+00 : f32
    %276 = vector.shape_cast %275 : vector<1x256xi1> to vector<1x256xi1>
    %277 = vector.broadcast %276 : vector<1x256xi1> to vector<8x256xi1>
    %278 = vector.broadcast %cst_135 : f32 to vector<8x256xf32>
    %279 = arith.select %277, %273, %278 : vector<8x256xi1>, vector<8x256xf32>
    %280 = arith.maximumf %272, %279 : vector<8x256xf32>
    %281 = arith.maximumf %265, %280 : vector<8x256xf32>
    %cst_136 = arith.constant 0.000000e+00 : f32
    %282 = vector.broadcast %cst_136 : f32 to vector<8x256xf32>
    %c0_137 = arith.constant 0 : index
    %c128_138 = arith.constant 128 : index
    %283 = vector.load %arg9[%c0_137, %c128_138] : memref<8x448xf32, #tpu.memory_space<vmem>>, vector<8x256xf32>
    tpu.vector_store %arg9[%c0_137, %c128_138], %249 {strides = array<i32>} : memref<8x448xf32, #tpu.memory_space<vmem>>, vector<8x256xf32>,
    %c0_139 = arith.constant 0 : index
    %c112_140 = arith.constant 112 : index
    %284 = vector.load %arg9[%c0_139, %c112_140] : memref<8x448xf32, #tpu.memory_space<vmem>>, vector<8x256xf32>
    %c0_141 = arith.constant 0 : index
    %c144_142 = arith.constant 144 : index
    %285 = vector.load %arg9[%c0_141, %c144_142] : memref<8x448xf32, #tpu.memory_space<vmem>>, vector<8x256xf32>
    %286 = arith.maximumf %284, %285 : vector<8x256xf32>
    %287 = arith.maximumf %249, %286 : vector<8x256xf32>
    %288 = arith.addf %282, %287 : vector<8x256xf32>
    %c0_143 = arith.constant 0 : index
    %c128_144 = arith.constant 128 : index
    %289 = vector.load %arg9[%c0_143, %c128_144] : memref<8x448xf32, #tpu.memory_space<vmem>>, vector<8x256xf32>
    tpu.vector_store %arg9[%c0_143, %c128_144], %265 {strides = array<i32>} : memref<8x448xf32, #tpu.memory_space<vmem>>, vector<8x256xf32>,
    %c0_145 = arith.constant 0 : index
    %c112_146 = arith.constant 112 : index
    %290 = vector.load %arg9[%c0_145, %c112_146] : memref<8x448xf32, #tpu.memory_space<vmem>>, vector<8x256xf32>
    %c0_147 = arith.constant 0 : index
    %c144_148 = arith.constant 144 : index
    %291 = vector.load %arg9[%c0_147, %c144_148] : memref<8x448xf32, #tpu.memory_space<vmem>>, vector<8x256xf32>
    %292 = arith.maximumf %290, %291 : vector<8x256xf32>
    %293 = arith.maximumf %265, %292 : vector<8x256xf32>
    %c0_149 = arith.constant 0 : index
    %c96_150 = arith.constant 96 : index
    %294 = vector.load %arg9[%c0_149, %c96_150] : memref<8x448xf32, #tpu.memory_space<vmem>>, vector<8x256xf32>
    %c0_151 = arith.constant 0 : index
    %c160_152 = arith.constant 160 : index
    %295 = vector.load %arg9[%c0_151, %c160_152] : memref<8x448xf32, #tpu.memory_space<vmem>>, vector<8x256xf32>
    %296 = arith.maximumf %294, %295 : vector<8x256xf32>
    %297 = arith.maximumf %293, %296 : vector<8x256xf32>
    %298 = arith.addf %288, %297 : vector<8x256xf32>
    %c0_153 = arith.constant 0 : index
    %c128_154 = arith.constant 128 : index
    %299 = vector.load %arg9[%c0_153, %c128_154] : memref<8x448xf32, #tpu.memory_space<vmem>>, vector<8x256xf32>
    tpu.vector_store %arg9[%c0_153, %c128_154], %281 {strides = array<i32>} : memref<8x448xf32, #tpu.memory_space<vmem>>, vector<8x256xf32>,
    %c0_155 = arith.constant 0 : index
    %c112_156 = arith.constant 112 : index
    %300 = vector.load %arg9[%c0_155, %c112_156] : memref<8x448xf32, #tpu.memory_space<vmem>>, vector<8x256xf32>
    %c0_157 = arith.constant 0 : index
    %c144_158 = arith.constant 144 : index
    %301 = vector.load %arg9[%c0_157, %c144_158] : memref<8x448xf32, #tpu.memory_space<vmem>>, vector<8x256xf32>
    %302 = arith.maximumf %300, %301 : vector<8x256xf32>
    %303 = arith.maximumf %281, %302 : vector<8x256xf32>
    %c0_159 = arith.constant 0 : index
    %c96_160 = arith.constant 96 : index
    %304 = vector.load %arg9[%c0_159, %c96_160] : memref<8x448xf32, #tpu.memory_space<vmem>>, vector<8x256xf32>
    %c0_161 = arith.constant 0 : index
    %c160_162 = arith.constant 160 : index
    %305 = vector.load %arg9[%c0_161, %c160_162] : memref<8x448xf32, #tpu.memory_space<vmem>>, vector<8x256xf32>
    %306 = arith.maximumf %304, %305 : vector<8x256xf32>
    %307 = arith.maximumf %303, %306 : vector<8x256xf32>
    %c0_163 = arith.constant 0 : index
    %c80_164 = arith.constant 80 : index
    %308 = vector.load %arg9[%c0_163, %c80_164] : memref<8x448xf32, #tpu.memory_space<vmem>>, vector<8x256xf32>
    %c0_165 = arith.constant 0 : index
    %c176_166 = arith.constant 176 : index
    %309 = vector.load %arg9[%c0_165, %c176_166] : memref<8x448xf32, #tpu.memory_space<vmem>>, vector<8x256xf32>
    %310 = arith.maximumf %308, %309 : vector<8x256xf32>
    %311 = arith.maximumf %307, %310 : vector<8x256xf32>
    %312 = arith.addf %298, %311 : vector<8x256xf32>
    %cst_167 = arith.constant 0.333333343 : f32
    %313 = vector.broadcast %cst_167 : f32 to vector<8x256xf32>
    %314 = arith.mulf %312, %313 : vector<8x256xf32>
    %315 = arith.mulf %314, %232 : vector<8x256xf32>
    %316 = vector.broadcast %226 : vector<1x256xf32> to vector<8x256xf32>
    %317 = arith.addf %316, %315 : vector<8x256xf32>
    %cst_168 = arith.constant 1.000000e+00 : f32
    %318 = vector.broadcast %cst_168 : f32 to vector<8x256xf32>
    %319 = arith.addf %317, %318 : vector<8x256xf32>
    %320 = arith.mulf %207, %319 : vector<8x256xf32>
    %c0_169 = arith.constant 0 : index
    %c0_170 = arith.constant 0 : index
    %c0_171 = arith.constant 0 : index
    %321 = vector.load %arg8[%c0_169, %c0_170, %c0_171] : memref<1x8x256xf32, #tpu.memory_space<vmem>>, vector<1x8x256xf32>
    %322 = vector.shape_cast %321 : vector<1x8x256xf32> to vector<8x256xf32>
    %323 = vector.shape_cast %320 : vector<8x256xf32> to vector<1x8x256xf32>
    tpu.vector_store %arg8[%c0_169, %c0_170, %c0_171], %323 {strides = array<i32>} : memref<1x8x256xf32, #tpu.memory_space<vmem>>, vector<1x8x256xf32>,
    return
  }
  func.func @transform_0(%arg0: i32) -> (i32, i32, i32) {
    %c0_i32 = arith.constant 0 : i32
    %c0_i32_0 = arith.constant 0 : i32
    %c0_i32_1 = arith.constant 0 : i32
    return %arg0, %c0_i32, %c0_i32_0 : i32, i32, i32
  }
  func.func @transform_1(%arg0: i32) -> (i32, i32) {
    %c0_i32 = arith.constant 0 : i32
    %c0_i32_0 = arith.constant 0 : i32
    %c0_i32_1 = arith.constant 0 : i32
    return %c0_i32, %c0_i32_0 : i32, i32
  }
  func.func @transform_2(%arg0: i32) -> (i32, i32) {
    %c0_i32 = arith.constant 0 : i32
    %c0_i32_0 = arith.constant 0 : i32
    %c0_i32_1 = arith.constant 0 : i32
    return %c0_i32, %c0_i32_0 : i32, i32
  }
  func.func @transform_3(%arg0: i32) -> (i32, i32) {
    %c0_i32 = arith.constant 0 : i32
    %c0_i32_0 = arith.constant 0 : i32
    %c0_i32_1 = arith.constant 0 : i32
    return %c0_i32, %c0_i32_0 : i32, i32
  }
  func.func @transform_4(%arg0: i32) -> (i32, i32) {
    %c0_i32 = arith.constant 0 : i32
    %c0_i32_0 = arith.constant 0 : i32
    %c0_i32_1 = arith.constant 0 : i32
    return %c0_i32, %c0_i32_0 : i32, i32
  }
  func.func @transform_5(%arg0: i32) -> (i32, i32) {
    %c0_i32 = arith.constant 0 : i32
    %c0_i32_0 = arith.constant 0 : i32
    %c0_i32_1 = arith.constant 0 : i32
    return %c0_i32, %c0_i32_0 : i32, i32
  }
  func.func @transform_6(%arg0: i32) -> (i32, i32) {
    %c0_i32 = arith.constant 0 : i32
    %c0_i32_0 = arith.constant 0 : i32
    %c0_i32_1 = arith.constant 0 : i32
    return %c0_i32, %c0_i32_0 : i32, i32
  }
  func.func @transform_7(%arg0: i32) -> (i32, i32, i32) {
    %c0_i32 = arith.constant 0 : i32
    %c0_i32_0 = arith.constant 0 : i32
    %c0_i32_1 = arith.constant 0 : i32
    return %arg0, %c0_i32, %c0_i32_0 : i32, i32, i32
  }
}

</mosaic_0001>

<bundles_post_ra>
// kernel: tpu_custom_call.1
= control target key start
LH: loop header
LB: loop body
LE: loop exit
PB: predicated region body
PF: predicated region fallthrough
CT: control target
= control target key end

     0   :  { %12 = vsyncpa [#allocation4], 0  ;;  %s2663_s0 = inlined_call_operand.vmem [shape: f32[2,8,256], index: 0, kind: input, shape index: {}]   ;;  %s2664_s1 = inlined_call_operand.hbm [shape: bf16[8,72], index: 1, kind: input, shape index: {}]   ;;  %s2665_s2 = inlined_call_operand.hbm [shape: bf16[8,72], index: 2, kind: input, shape index: {}]   ;;  %s2666_s3 = inlined_call_operand.hbm [shape: bf16[8,72], index: 3, kind: input, shape index: {}]   ;;  %s2667_s4 = inlined_call_operand.vmem [shape: f32[8,3], index: 4, kind: input, shape index: {}]   ;;  %s2668_s5 = inlined_call_operand.vmem [shape: f32[8,3], index: 5, kind: input, shape index: {}]   ;;  %s2669_s6 = inlined_call_operand.vmem [shape: f32[8,3], index: 6, kind: input, shape index: {}]   ;;  %s2670_s7 = inlined_call_operand.hbm [shape: f32[2,8,256], index: 7, kind: output, shape index: {}]  }
   0x1   :  { %13 = vsyncpa [#allocation7], 0 }
   0x2   :  { %14 = vsyncpa [#allocation5], 0 }
   0x3   :  { %16 = vsyncpa [#allocation5 + $0x1], 0  ;;  %s2018_s24 = smov 0   ;;  %s2020_s25 = smov 0  }
   0x4   :  { %s2022_s26 = smov 0   ;;  %s2024_s27 = smov 0  }
   0x5 LB: > { %s2039_s28 = sadd.s32 4294967295, %s1942_s27   ;;  %s1449_s29 = sadd.s32 4294967294, %s1942_s27   ;;  %s1942_s27 = sphi %s2024_s27, %s2759_s27   ;;  %s1938_s26 = sphi %s2022_s26, %s2758_s26   ;;  %s1934_s25 = sphi %s2020_s25, %s2757_s25   ;;  %s1930_s24 = sphi %s2018_s24, %s2756_s24  }
   0x6   : > { %s2043_s30 = sadd.s32 1, %s1942_s27   ;;  %s181_s8 = sadd.s32 1, %s1938_s26 }
   0x7   : > { %s178_s9 = ssub.s32 %s1942_s27, %s2043_s30  ;;  %p191_p0 = scmp.ne.s32.totalorder %s1938_s26, %s1934_s25 }
   0x8   : > { %p179_p1 = scmp.eq.s32.totalorder %s178_s9, 0  ;;  %p192_p2 = scmp.eq.s32.totalorder %s2039_s28, 1 }
   0x9   : > { %p197_p3 = scmp.ne.s32.totalorder %s1934_s25, %s1930_s24  ;;  %p198_p4 = scmp.eq.s32.totalorder %s1449_s29, 1 }
   0xa   : > { %s2054_s10 = scalar_select %p179_p1, %s1938_s26, %s181_s8  }
   0xb   : > { %p2056_p5 = por %p192_p2, %p191_p0  ;;  %p2060_p6 = por %p198_p4, %p197_p3 }
   0xc   : > { %p1450_p7 = scmp.ge.s32.totalorder %s1942_s27, 1  ;;  %p205_p8 = scmp.lt.s32.totalorder %s1942_s27, 3 }
   0xd   : > { %s2693_s11 = scalar_select %p2056_p5, 1, 0 }
   0xe   : > { %s2694_s12 = scalar_select %p2060_p6, 1, 0 }
   0xf   : > { %p2671_p9 = scmp.eq.s32.totalorder %s2039_s28, 0  ;;  %p2067_p10 = pnand %p1450_p7, %p205_p8 }
  0x10   : > { %s1944_s14 = smov [#allocation6]   ;;  %s1945_s16 = smov [#allocation3]  }
  0x11   : > { %s2695_s13 = scalar_select %p2067_p10, 1, 0 }
  0x12   : > { %s229_s15 = sshll.u32 %s1944_s14, 4  ;;  %p1561_p11 = pneg %p2067_p10  ;;  %s230_s15 = int_to_ptr.vmem [resolvable:$true] %s229_s15 }
  0x13   : > { %s218_s17 = sshll.u32 %s1945_s16, 4  ;;  %s1946_s19 = smov [#allocation8]   ;;  %s219_s17 = int_to_ptr.vmem [resolvable:$true] %s218_s17 }
  0x14   : > { %p2075_p12 = pnand %p2671_p9, %p1561_p11  ;;  %s240_s20 = sshll.u32 %s1946_s19, 4  ;;  %s2079_s20 = int_to_ptr.vmem [resolvable:$true] %s240_s20 }
  0x15   : > { %s1807_s21 = scalar_lea.vmem %s230_s15, 64  ;;  %p1815_p3 = scmp.lt.s32.totalorder %s230_s15, %s230_s15 }
  0x16   : > { %p1798_p13 = pneg %p2075_p12  ;;  %p1808_p0 = scmp.ne.s32.totalorder %s230_s15, %s1807_s21 }
  0x17   : > { %p1816_p4 = scmp.lt.s32.totalorder %s1807_s21, %s1807_s21 }
  0x18   : > { %p1810_p1 = pnand %p1808_p0, %p1798_p13 }
  0x19   : > { %p1817_p7 = por %p1816_p4, %p1815_p3 }
  0x1a   : > { %p1811_p2 = pneg %p1810_p1 }
  0x1c   : > { %p1818_p8 = pnand %p1817_p7, %p1811_p2 }
  0x1e   : > { %1821 = shalt.err (!%p1818_p8)
}
  0x1f   : > { %1567 = dma.hbm_to_vmem [thread:$0]  (!%p2075_p12), %s2665_s2, 64, %s230_s15, [#allocation7]  }
  0x20   : > { %s1833_s29 = scalar_lea.vmem %s219_s17, 64  ;;  %p1841_p0 = scmp.lt.s32.totalorder %s219_s17, %s219_s17 }
  0x21   : > { %p1834_p11 = scmp.ne.s32.totalorder %s219_s17, %s1833_s29  ;;  %p1842_p1 = scmp.lt.s32.totalorder %s1833_s29, %s1833_s29 }
  0x23   : > { %p1836_p9 = pnand %p1834_p11, %p1798_p13  ;;  %p1843_p5 = por %p1842_p1, %p1841_p0 }
  0x25   : > { %p1837_p6 = pneg %p1836_p9 }
  0x27   : > { %p1844_p10 = pnand %p1843_p5, %p1837_p6 }
  0x29   : > { %1847 = shalt.err (!%p1844_p10)
}
  0x2a   : > { %1564 = dma.hbm_to_vmem [thread:$0]  (!%p2075_p12), %s2664_s1, 64, %s219_s17, [#allocation4]  }
  0x2b   : > { %s1859_s14 = scalar_lea.vmem %s2079_s20, 64  ;;  %p1867_p4 = scmp.lt.s32.totalorder %s2079_s20, %s2079_s20 }
  0x2c   : > { %p1860_p2 = scmp.ne.s32.totalorder %s2079_s20, %s1859_s14  ;;  %p1868_p5 = scmp.lt.s32.totalorder %s1859_s14, %s1859_s14 }
  0x2e   : > { %p1862_p9 = pnand %p1860_p2, %p1798_p13  ;;  %p1869_p6 = por %p1868_p5, %p1867_p4 }
  0x30   : > { %p1863_p3 = pneg %p1862_p9 }
  0x32   : > { %p1870_p10 = pnand %p1869_p6, %p1863_p3 }
  0x34   : > { %1873 = shalt.err (!%p1870_p10)
}
  0x35   : > { %1570 = dma.hbm_to_vmem [thread:$0]  (!%p2075_p12), %s2666_s3, 64, %s2079_s20, [#allocation7]  }
  0x36   : > { %p2697_p7 = scmp.ne.s32.totalorder %s2695_s13, 0 }
  0x37   : > { %p2698_p8 = scmp.eq.s32.totalorder (!%p2697_p7), %s2039_s28, 0 }
  0x38   : > { %270 = sbr.rel (%p2697_p7) target bundleno = 1586 (0x632), region = 48 }
  0x3d   : > { %1917 = dma.done.wait (%p2698_p8), [#allocation4], 64   ;;  %p2699_p13 = pmov %p2698_p8 }
  0x3e   : > { %p2700_p11 = pmov %p2698_p8 }
  0x3f   : > { %1919 = vsyncadd (%p2699_p13), [#allocation4], 4294967232 }
  0x40   : > { %1921 = dma.done.wait (%p2700_p11), [#allocation7], 128   ;;  %p2701_p0 = pmov %p2698_p8 }
  0x41   : > { %vm2675_vm0 = vcmask 523264   ;;  %p310_p1 = scmp.lt.s32.totalorder %s2039_s28, 1  ;;  %v1947_v0 = vmov 0.0   ;;  %s1948_s21 = smov 111   ;;  %v1954_v6 = vmov 0   ;;  %v1956_v7 = vmov 1  }
  0x42   : > { %1923 = vsyncadd (%p2701_p0), [#allocation7], 4294967168  ;;  %345 = vst.msk [vmem:[#allocation2 + $0x18] sm:$0xff] %vm2675_vm0, %v1947_v0  ;;  %s1949_s22 = smov 113   ;;  %s1950_s23 = smov 112   ;;  %530 = vmatprep.mubr.bf16.mxu0 %v1954_v6  ;;  %1687 = vset.pattern.permute.xlu0 %v1954_v6  ;;  %v481_v8 = vld [vmem:[%s2667_s4] sm:$0xff]  ;;  %v316_v10 = vlaneseq }
  0x43   : > { %343 = vst [vmem:[#allocation2] sm:$0xff] %v1947_v0  ;;  %s311_s13 = scalar_select %p310_p1, %s2039_s28, 1  ;;  %733 = vmatprep.mubr.bf16.mxu1 %v1954_v6  ;;  %1688 = vset.pattern.permute.xlu1 %v1956_v7  ;;  %v1958_v9 = vmov 2   ;;  %vm441_vm2 = vcmask 908288   ;;  %vm428_vm4 = vcmask 924672   ;;  %vm465_vm5 = vcmask 916480  }
  0x44   : > { %s1951_s29 = smov 127   ;;  %s1952_s8 = smov 15   ;;  %v317_v11 = vand.u32 127, %v316_v10  ;;  %vm491_vm7 = vcmask 1043456   ;;  %vm1959_vm8 = vmmov 1   ;;  %vm2682_vm11 = vcmask 1039360  }
  0x45   : > { %s1545_s17 = sshll.u32 %s311_s13, 4  ;;  %s1953_s9 = smov 1   ;;  %vm387_vm14 = vcmask 121856  }
  0x46   : > { %s314_s20 = scalar_lea.vmem %s2663_s0, %s1545_s17  ;;  %s1955_s14 = smov 17   ;;  %v318_v12 = vadd.s32 128, %v317_v11  ;;  %v2163_v15 = vand.u32 15, %v317_v11 }
  0x47   : > { %v2130_v1 = vld [vmem:[%s314_s20] sm:$0xff]  ;;  %v2132_v2 = vld [vmem:[%s314_s20 + $0x8] sm:$0xff]  ;;  %s2684_s15 = smov 16   ;;  %s1960_s17 = smov 94  }
  0x48   : > { %v1647_v5 = vpack.i.bf16 %v2132_v2, %v2130_v1  ;;  %v2161_v14 = vand.u32 15, %v318_v12  ;;  %vm2677_vm3 = vcmp.lt.s32.totalorder %v2163_v15, 15  ;;  %vm2680_vm10 = vcmp.ge.s32.totalorder %v2163_v15, 1  ;;  %s1961_s18 = smov 30   ;;  %s1962_s19 = smov 96  }
  0x49   : > { %v2134_v3 = vld [vmem:[#allocation2 + $0x18] sm:$0xff]  ;;  %vm2191_vm12 = vmpackc.low %vm1959_vm8, %vm2680_vm10  ;;  %s1963_s20 = smov 98   ;;  %s1968_s13 = smov 77  }
  0x4a   : > { %439 = vrot.lane.b32.xlu0 %v2134_v3, %s1948_s21  ;;  %v1652_v4 = vpack.i.bf16 %v2134_v3, %v2132_v2  ;;  %vm2676_vm1 = vcmp.lt.s32.totalorder %v2161_v14, 15  ;;  %vm2679_vm6 = vcmp.ge.s32.totalorder %v2161_v14, 1  ;;  %vm1472_vm15 = vmpackc.low %vm2677_vm3, %vm1959_vm8  ;;  %s1974_s16 = smov 51   ;;  %p2754_p2 = scmp.ne.s32.totalorder %s2693_s11, 0 }
  0x4b   : > { %vm2177_vm9 = vmpackc.low %vm1959_vm8, %vm2679_vm6 }
  0x4c   : > { %1653 = vrot.lane.b32.xlu1 %v1652_v4, %s1949_s22  ;;  %vm1469_vm13 = vmpackc.low %vm2676_vm1, %vm1959_vm8 }
  0x4e   : > { %1648 = vrot.lane.b32.xlu0 %v1647_v5, %s1948_s21  ;;  %s1964_s21 = smov 126  }
  0x50   : > { %1658 = vrot.lane.b32.xlu1 %v1652_v4, %s1950_s23 }
  0x52   : > { %422 = vrot.lane.b32.xlu0 %v2130_v1, %s1949_s22  ;;  %s1965_s22 = smov 2  }
  0x54   : > { %459 = vrot.lane.b32.xlu1 %v2130_v1, %s1950_s23  ;;  %s2686_s23 = smov 32  }
  0x56   : > { %1663 = vrot.lane.b32.xlu0 %v1652_v4, %s1951_s29 }
  0x58   : > { %409 = vrot.lane.b32.xlu1 %v2130_v1, %s1951_s29 }
  0x5a   : > { %1668 = vrot.lane.b32.xlu0 %v1647_v5, %s1952_s8 }
  0x5c   : > { %1673 = vrot.lane.b32.xlu1 %v1647_v5, %s1953_s9 }
  0x5e   : > { %381 = vrot.lane.b32.xlu0 %v1947_v0, %s1952_s8  ;;  %s1967_s8 = smov 34  }
  0x60   : > { %394 = vrot.lane.b32.xlu1 %v1947_v0, %s1953_s9 }
  0x62   : > { %1678 = vrot.lane.b32.xlu0 %v1647_v5, %s1955_s14 }
  0x64   : > { %1683 = vrot.lane.b32.xlu1 %v1647_v5, %s2684_s15 }
  0x66   : > { %362 = vrot.lane.b32.xlu0 %v1947_v0, %s1955_s14  ;;  %s1973_s14 = smov 3  }
  0x68   : > { %448 = vrot.lane.b32.xlu1 %v1947_v0, %s2684_s15  ;;  %s2733_s15 = smov 16  }
  0x6a   : > { %484 = vperm.xlu0 %1687, %v481_v8  }
  0x6c   : > { %542 = vperm.xlu1 %1688, %v481_v8  }
  0x6e   : > { %586 = vrot.lane.b32.xlu0 %v1947_v0, %s1961_s18 }
  0x70   : > { %1689 = vset.pattern.permute.xlu1 %v1958_v9 }
  0x71   : > { %548 = vperm.xlu1 %1689, %v481_v8  }
  0x75   : > { %1730 = vset.pattern.permute.xlu1 %v1956_v7 }
  0x76   : > { %644 = vrot.lane.b32.xlu1 %v2134_v3, %s1960_s17 }
  0xbc   : > { %v440_v13 = vpop.permute.xlu0 %439 }
  0xbe   : > { %v1654_v16 = vpop.permute.xlu1 %1653 }
  0xbf   : > { %v1656_v18 = vunpack.i.h.bf16 %v1654_v16  ;;  %v1655_v19 = vunpack.i.l.bf16 %v1654_v16 }
  0xc0   : > { %v1649_v17 = vpop.permute.xlu0 %1648 }
  0xc1   : > { %v1651_v20 = vunpack.i.h.bf16 %v1649_v17  ;;  %v1650_v21 = vunpack.i.l.bf16 %v1649_v17  ;;  %v430_v30 = vsel %vm428_vm4, %v1655_v19, %v1656_v18 }
  0xc2   : > { %v1659_v22 = vpop.permute.xlu1 %1658 }
  0xc3   : > { %v1661_v23 = vunpack.i.h.bf16 %v1659_v22  ;;  %v1660_v24 = vunpack.i.l.bf16 %v1659_v22  ;;  %v443_v25 = vsel %vm441_vm2, %v1651_v20, %v440_v13  ;;  %v442_v26 = vsel %vm441_vm2, %v1650_v21, %v1651_v20  ;;  %v480_v20 = vld [vmem:[#allocation3] sm:$0xf] }
  0xc4   : > { %v423_v27 = vpop.permute.xlu0 %422  ;;  %v447_v28 = vsel %vm2676_vm1, %v443_v25, 0.0  ;;  %v446_v29 = vsel %vm2677_vm3, %v442_v26, 0.0  ;;  %vm400_vm2 = vcmask 7168  }
  0xc5   : > { %v479_v31 = vpack.c.bf16 %v447_v28, %v447_v28  ;;  %v467_v32 = vsel %vm465_vm5, %v1660_v24, %v1661_v23  ;;  %v478_v33 = vpack.c.bf16 %v446_v29, %v446_v29  ;;  %v429_v40 = vsel %vm428_vm4, %v423_v27, %v1655_v19  ;;  %vm1475_vm4 = vmpackc.low %vm2679_vm6, %vm2676_vm1 }
  0xc6   : > { %v460_v34 = vpop.permute.xlu1 %459  ;;  %v1464_v35 = vpack.c.bf16 %v467_v32, %v430_v30  ;;  %vm2692_vm1 = vcmp.ge.s32.totalorder %v2163_v15, 2  ;;  %vm592_vm6 = vcmask 244736  }
  0xc7   : > { %1462 = vmatprep.subr.msk.bf16.mxu0 %vm491_vm7, %v479_v31  ;;  %v466_v37 = vsel %vm465_vm5, %v460_v34, %v1660_v24  ;;  %v493_v38 = vsel %vm491_vm7, %v478_v33, 0  ;;  %vm1478_vm5 = vmpackc.low %vm2680_vm10, %vm2677_vm3 }
  0xc8   : > { %505 = vmatpush1.bf16.msra.mxu0 %v493_v38  ;;  %v1664_v39 = vpop.permute.xlu0 %1663  ;;  %v1467_v44 = vpack.c.bf16 %v466_v37, %v429_v40  ;;  %v686_v38 = vld [vmem:[%s2668_s5] sm:$0xff]  ;;  %vm2286_vm3 = vmpackc.low %vm1959_vm8, %vm2692_vm1 }
  0xc9   : > { %v1666_v41 = vunpack.i.h.bf16 %v1664_v39  ;;  %v1665_v42 = vunpack.i.l.bf16 %v1664_v39  ;;  %1465 = vmatprep.subr.msk.bf16.mxu0 %vm2177_vm9, %v1464_v35 }
  0xca   : > { %v410_v45 = vpop.permute.xlu1 %409 }
  0xcb   : > { %v416_v46 = vsel %vm2682_vm11, %v410_v45, %v1665_v42  ;;  %v417_v47 = vsel %vm2682_vm11, %v1665_v42, %v1666_v41 }
  0xcc   : > { %1468 = vmatpush1.bf16.msk.msra.mxu0 %vm2191_vm12, %v1467_v44  ;;  %v1669_v48 = vpop.permute.xlu0 %1668  ;;  %v1470_v49 = vpack.c.bf16 %v417_v47, %v2132_v2  ;;  %v1473_v52 = vpack.c.bf16 %v416_v46, %v2130_v1 }
  0xcd   : > { %v1671_v50 = vunpack.i.h.bf16 %v1669_v48  ;;  %v1670_v51 = vunpack.i.l.bf16 %v1669_v48 }
  0xce   : > { %1471 = vmatprep.subr.msk.bf16.mxu0 %vm1469_vm13, %v1470_v49  ;;  %v1674_v53 = vpop.permute.xlu1 %1673  ;;  %vm368_vm13 = vcmask 138240  }
  0xcf   : > { %v1676_v54 = vunpack.i.h.bf16 %v1674_v53  ;;  %v1675_v55 = vunpack.i.l.bf16 %v1674_v53  ;;  %v389_v56 = vsel %vm387_vm14, %v1670_v51, %v1671_v50 }
  0xd0   : > { %1474 = vmatpush1.bf16.msk.msra.mxu0 %vm1472_vm15, %v1473_v52  ;;  %v382_v57 = vpop.permute.xlu0 %381  ;;  %vm2674_vm15 = vcmask 130048  }
  0xd1   : > { %v402_v58 = vsel %vm400_vm2, %v1675_v55, %v1676_v54  ;;  %v388_v61 = vsel %vm387_vm14, %v382_v57, %v1670_v51  ;;  %vm487_vm14 = vcmask 588800  }
  0xd2   : > { %v395_v59 = vpop.permute.xlu1 %394  ;;  %v1476_v60 = vpack.c.bf16 %v402_v58, %v389_v56 }
  0xd3   : > { %v401_v62 = vsel %vm400_vm2, %v395_v59, %v1675_v55 }
  0xd4   : > { %v1479_v63 = vpack.c.bf16 %v401_v62, %v388_v61  ;;  %1477 = vmatprep.subr.msk.bf16.mxu0 %vm1475_vm4, %v1476_v60  ;;  %v1679_v1 = vpop.permute.xlu0 %1678  ;;  %vm2689_vm4 = vcmp.lt.s32.totalorder %v2163_v15, 14 }
  0xd5   : > { %v1681_v2 = vunpack.i.h.bf16 %v1679_v1  ;;  %v1680_v4 = vunpack.i.l.bf16 %v1679_v1  ;;  %vm2301_vm10 = vmpackc.low %vm2689_vm4, %vm1959_vm8 }
  0xd6   : > { %v1684_v5 = vpop.permute.xlu1 %1683  ;;  %1480 = vmatpush1.bf16.msk.msra.mxu0 %vm1478_vm5, %v1479_v63  ;;  %vm2678_vm5 = vcmask 785408  }
  0xd7   : > { %v1686_v7 = vunpack.i.h.bf16 %v1684_v5  ;;  %v1685_v8 = vunpack.i.l.bf16 %v1684_v5  ;;  %v370_v10 = vsel %vm368_vm13, %v1680_v4, %v1681_v2 }
  0xd8   : > { %v363_v11 = vpop.permute.xlu0 %362 }
  0xd9   : > { %v456_v12 = vsel %vm2674_vm15, %v1685_v8, %v1686_v7  ;;  %v369_v17 = vsel %vm368_vm13, %v363_v11, %v1680_v4  ;;  %vm633_vm13 = vcmask 801792  }
  0xda   : > { %v1482_v13 = vpack.c.bf16 %v456_v12, %v370_v10  ;;  %v449_v16 = vpop.permute.xlu1 %448 }
  0xdb   : > { %v455_v18 = vsel %vm2674_vm15, %v449_v16, %v1685_v8  ;;  %vm2691_vm15 = vcmp.ge.s32.totalorder %v2161_v14, 2 }
  0xdc   : > { %v1485_v19 = vpack.c.bf16 %v455_v18, %v369_v17  ;;  %1483 = vmatprep.subr.msk.bf16.mxu0 %vm2177_vm9, %v1482_v13  ;;  %vm646_vm9 = vcmask 769024   ;;  %vm2272_vm0 = vmpackc.low %vm1959_vm8, %vm2691_vm15 }
  0xde   : > { %1486 = vmatpush1.bf16.msk.msra.mxu0 %vm2191_vm12, %v1485_v19  ;;  %vm2683_vm12 = vcmp.lt.s32.totalorder %v2161_v14, 14 }
  0xdf   : > { %vm1501_vm11 = vmpackc.low %vm2691_vm15, %vm2683_vm12 }
  0xe1   : > { %1487 = vmatmul.mubr.msk.bf16.vlgmr.msra.gmra.mxu0 %vm487_vm14, %v480_v20 }
  0xe2   : > { %936 = vmatprep.mubr.bf16.mxu0 %v1954_v6 }
  0xe5   : > { %v485_v21 = vpop.permute.xlu0 %484 }
  0xe7   : > { %v543_v22 = vpop.permute.xlu1 %542 }
  0xe9   : > { %v2258_v40 = vpop.permute.xlu0 %586 }
  0xec   : > { %v549_v29 = vpop.permute.xlu1 %548 }
  0xf0   : > { %v645_v39 = vpop.permute.xlu1 %644 }
 0x1a1   : > { %v532_v23 = vpop.f32.mrf.mxu0 }
 0x1a2   : > { %v533_v24 = vadd.f32 %v532_v23, %v485_v21 }
 0x1a3   : > { %v534_v25 = vpop.f32.mrf.mxu0 }
 0x1a4   : > { %v539_v26 = vmax.f32 %v533_v24, 0.0  ;;  %v535_v27 = vadd.f32 %v534_v25, %v485_v21 }
 0x1a5   : > { %v536_v28 = vpop.f32.mrf.mxu0 }
 0x1a6   : > { %v545_v30 = vmul.f32 %v543_v22, %v539_v26  ;;  %v540_v31 = vmax.f32 %v535_v27, 0.0 }
 0x1a7   : > { %v537_v32 = vpop.f32.mrf.mxu0 }
 0x1a8   : > { %v546_v33 = vmul.f32 %v543_v22, %v540_v31  ;;  %v2230_v34 = vadd.f32 %v549_v29, %v545_v30 }
 0x1aa   : > { %v2232_v35 = vadd.f32 %v549_v29, %v546_v33  ;;  %664 = vrot.lane.b32.xlu1 %v2230_v34, %s1962_s19  ;;  %627 = vrot.lane.b32.xlu0 %v2230_v34, %s1963_s20 }
 0x1ac   : > { %v1690_v36 = vpack.i.bf16 %v2232_v35, %v2230_v34  ;;  %v1700_v37 = vpack.i.bf16 %v2134_v3, %v2232_v35 }
 0x1ae   : > { %614 = vrot.lane.b32.xlu1 %v2230_v34, %s1964_s21  ;;  %1691 = vrot.lane.b32.xlu0 %v1690_v36, %s1960_s17  ;;  %s1969_s17 = smov 45  }
 0x1b2   : > { %1701 = vrot.lane.b32.xlu1 %v1700_v37, %s1962_s19  ;;  %1696 = vrot.lane.b32.xlu0 %v1700_v37, %s1963_s20  ;;  %s1971_s20 = smov 83  }
 0x1b6   : > { %599 = vrot.lane.b32.xlu1 %v1947_v0, %s1965_s22  ;;  %1706 = vrot.lane.b32.xlu0 %v1700_v37, %s1964_s21 }
 0x1ba   : > { %1716 = vrot.lane.b32.xlu1 %v1690_v36, %s1965_s22  ;;  %1711 = vrot.lane.b32.xlu0 %v1690_v36, %s1961_s18  ;;  %s1970_s18 = smov 80  }
 0x1be   : > { %1726 = vrot.lane.b32.xlu1 %v1690_v36, %s2686_s23  ;;  %1721 = vrot.lane.b32.xlu0 %v1690_v36, %s1967_s8 }
 0x1c2   : > { %653 = vrot.lane.b32.xlu1 %v1947_v0, %s2686_s23  ;;  %567 = vrot.lane.b32.xlu0 %v1947_v0, %s1967_s8  ;;  %s1972_s8 = smov 125   ;;  %s1975_s23 = smov 48  }
 0x1c6   : > { %689 = vperm.xlu0 %1687, %v686_v38   ;;  %745 = vperm.xlu1 %1730, %v686_v38  }
 0x1ca   : > { %1731 = vset.pattern.permute.xlu0 %v1958_v9  ;;  %847 = vrot.lane.b32.xlu1 %v2134_v3, %s1968_s13 }
 0x1cb   : > { %751 = vperm.xlu0 %1731, %v686_v38  }
 0x1cf   : > { %1772 = vset.pattern.permute.xlu0 %v1954_v6 }
 0x1d0   : > { %789 = vrot.lane.b32.xlu0 %v1947_v0, %s1969_s17 }
 0x21c   : > { %v665_v41 = vpop.permute.xlu1 %664  ;;  %v628_v42 = vpop.permute.xlu0 %627 }
 0x220   : > { %v615_v43 = vpop.permute.xlu1 %614  ;;  %v1692_v44 = vpop.permute.xlu0 %1691 }
 0x221   : > { %v1694_v45 = vunpack.i.h.bf16 %v1692_v44  ;;  %v1693_v46 = vunpack.i.l.bf16 %v1692_v44 }
 0x223   : > { %v648_v47 = vsel %vm646_vm9, %v1694_v45, %v645_v39  ;;  %v647_v48 = vsel %vm646_vm9, %v1693_v46, %v1694_v45  ;;  %vm2681_vm9 = vcmask 1031168   ;;  %v685_v46 = vld [vmem:[#allocation6] sm:$0xf] }
 0x224   : > { %v1702_v49 = vpop.permute.xlu1 %1701  ;;  %v1697_v6 = vpop.permute.xlu0 %1696  ;;  %v652_v50 = vsel %vm2683_vm12, %v648_v47, 0.0  ;;  %v651_v51 = vsel %vm2689_vm4, %v647_v48, 0.0 }
 0x225   : > { %v1704_v52 = vunpack.i.h.bf16 %v1702_v49  ;;  %v1703_v53 = vunpack.i.l.bf16 %v1702_v49  ;;  %v1699_v54 = vunpack.i.h.bf16 %v1697_v6  ;;  %v1698_v55 = vunpack.i.l.bf16 %v1697_v6 }
 0x226   : > { %v684_v56 = vpack.c.bf16 %v652_v50, %v652_v50  ;;  %v683_v57 = vpack.c.bf16 %v651_v51, %v651_v51 }
 0x227   : > { %v672_v58 = vsel %vm2678_vm5, %v1703_v53, %v1704_v52  ;;  %v635_v59 = vsel %vm633_vm13, %v1698_v55, %v1699_v54  ;;  %v671_v61 = vsel %vm2678_vm5, %v665_v41, %v1703_v53  ;;  %v634_v62 = vsel %vm633_vm13, %v628_v42, %v1698_v55  ;;  %vm1495_vm13 = vmpackc.low %vm2683_vm12, %vm1959_vm8 }
 0x228   : > { %v1490_v63 = vpack.c.bf16 %v672_v58, %v635_v59  ;;  %1488 = vmatprep.subr.msk.bf16.mxu1 %vm491_vm7, %v684_v56  ;;  %v600_v1 = vpop.permute.xlu1 %599  ;;  %v1707_v2 = vpop.permute.xlu0 %1706  ;;  %v696_v4 = vsel %vm491_vm7, %v683_v57, 0  ;;  %v1493_v10 = vpack.c.bf16 %v671_v61, %v634_v62  ;;  %vm605_vm5 = vcmask 15360   ;;  %vm1504_vm12 = vmpackc.low %vm2692_vm1, %vm2689_vm4 }
 0x229   : > { %v1709_v5 = vunpack.i.h.bf16 %v1707_v2  ;;  %v1708_v7 = vunpack.i.l.bf16 %v1707_v2  ;;  %708 = vmatpush1.bf16.msra.mxu1 %v696_v4  ;;  %vm776_vm1 = vcmask 416768  }
 0x22a   : > { %1491 = vmatprep.subr.msk.bf16.mxu1 %vm2272_vm0, %v1490_v63 }
 0x22b   : > { %v622_v11 = vsel %vm2681_vm9, %v1708_v7, %v1709_v5  ;;  %v621_v12 = vsel %vm2681_vm9, %v615_v43, %v1708_v7  ;;  %vm2688_vm9 = vcmask 261120  }
 0x22c   : > { %v1496_v13 = vpack.c.bf16 %v622_v11, %v2232_v35  ;;  %v1717_v16 = vpop.permute.xlu1 %1716  ;;  %v1712_v17 = vpop.permute.xlu0 %1711  ;;  %v1499_v23 = vpack.c.bf16 %v621_v12, %v2230_v34 }
 0x22d   : > { %v1719_v18 = vunpack.i.h.bf16 %v1717_v16  ;;  %v1718_v19 = vunpack.i.l.bf16 %v1717_v16  ;;  %v1714_v20 = vunpack.i.h.bf16 %v1712_v17  ;;  %v1713_v21 = vunpack.i.l.bf16 %v1712_v17  ;;  %1494 = vmatpush1.bf16.msk.msra.mxu1 %vm2286_vm3, %v1493_v10 }
 0x22e   : > { %1497 = vmatprep.subr.msk.bf16.mxu1 %vm1495_vm13, %v1496_v13  ;;  %vm573_vm13 = vcmask 277504  }
 0x22f   : > { %v607_v24 = vsel %vm605_vm5, %v1718_v19, %v1719_v18  ;;  %v594_v25 = vsel %vm592_vm6, %v1713_v21, %v1714_v20  ;;  %v606_v26 = vsel %vm605_vm5, %v600_v1, %v1718_v19  ;;  %v593_v27 = vsel %vm592_vm6, %v2258_v40, %v1713_v21 }
 0x230   : > { %v1502_v28 = vpack.c.bf16 %v607_v24, %v594_v25  ;;  %v1727_v29 = vpop.permute.xlu1 %1726  ;;  %v1722_v30 = vpop.permute.xlu0 %1721  ;;  %v1505_v37 = vpack.c.bf16 %v606_v26, %v593_v27  ;;  %vm783_vm6 = vcmp.lt.s32.totalorder %v2163_v15, 13 }
 0x231   : > { %v1729_v31 = vunpack.i.h.bf16 %v1727_v29  ;;  %v1728_v32 = vunpack.i.l.bf16 %v1727_v29  ;;  %v1724_v33 = vunpack.i.h.bf16 %v1722_v30  ;;  %v1723_v36 = vunpack.i.l.bf16 %v1722_v30  ;;  %1500 = vmatpush1.bf16.msk.msra.mxu1 %vm2301_vm10, %v1499_v23 }
 0x232   : > { %1503 = vmatprep.subr.msk.bf16.mxu1 %vm1501_vm11, %v1502_v28  ;;  %vm836_vm10 = vcmask 678912   ;;  %vm873_vm11 = vcmask 654336  }
 0x233   : > { %v661_v38 = vsel %vm2688_vm9, %v1728_v32, %v1729_v31  ;;  %v575_v39 = vsel %vm573_vm13, %v1723_v36, %v1724_v33 }
 0x234   : > { %v654_v40 = vpop.permute.xlu1 %653  ;;  %v568_v41 = vpop.permute.xlu0 %567  ;;  %v1508_v42 = vpack.c.bf16 %v661_v38, %v575_v39 }
 0x235   : > { %v660_v43 = vsel %vm2688_vm9, %v654_v40, %v1728_v32  ;;  %v574_v44 = vsel %vm573_vm13, %v568_v41, %v1723_v36  ;;  %1506 = vmatpush1.bf16.msk.msra.mxu1 %vm1504_vm12, %v1505_v37  ;;  %vm762_vm12 = vcmp.ge.s32.totalorder %v2161_v14, 3  ;;  %vm2690_vm13 = vcmask 1022976  }
 0x236   : > { %v1511_v45 = vpack.c.bf16 %v660_v43, %v574_v44  ;;  %1509 = vmatprep.subr.msk.bf16.mxu1 %vm2272_vm0, %v1508_v42  ;;  %vm849_vm0 = vcmask 629760   ;;  %vm761_vm9 = vcmp.ge.s32.totalorder %v2163_v15, 3 }
 0x237   : > { %vm2388_vm4 = vmpackc.low %vm1959_vm8, %vm761_vm9 }
 0x239   : > { %1512 = vmatpush1.bf16.msk.msra.mxu1 %vm2286_vm3, %v1511_v45  ;;  %vm784_vm3 = vcmp.lt.s32.totalorder %v2161_v14, 13 }
 0x23a   : > { %vm1527_vm15 = vmpackc.low %vm762_vm12, %vm784_vm3 }
 0x23c   : > { %1513 = vmatmul.mubr.msk.bf16.vlgmr.msra.gmra.mxu1 %vm487_vm14, %v685_v46 }
 0x241   : > { %v690_v47 = vpop.permute.xlu0 %689  ;;  %v746_v50 = vpop.permute.xlu1 %745 }
 0x245   : > { %v848_v63 = vpop.permute.xlu1 %847 }
 0x246   : > { %v752_v54 = vpop.permute.xlu0 %751 }
 0x24a   : > { %v2359_v1 = vpop.permute.xlu0 %789 }
 0x2fc   : > { %v735_v48 = vpop.f32.mrf.mxu1 }
 0x2fd   : > { %v736_v49 = vadd.f32 %v735_v48, %v690_v47 }
 0x2fe   : > { %v737_v6 = vpop.f32.mrf.mxu1 }
 0x2ff   : > { %v742_v51 = vmax.f32 %v736_v49, 0.0  ;;  %v738_v52 = vadd.f32 %v737_v6, %v690_v47 }
 0x300   : > { %v739_v53 = vpop.f32.mrf.mxu1 }
 0x301   : > { %v743_v55 = vmax.f32 %v738_v52, 0.0  ;;  %v748_v56 = vmul.f32 %v746_v50, %v742_v51 }
 0x302   : > { %v740_v57 = vpop.f32.mrf.mxu1 }
 0x303   : > { %v749_v58 = vmul.f32 %v746_v50, %v743_v55  ;;  %v2328_v59 = vadd.f32 %v752_v54, %v748_v56 }
 0x305   : > { %v2330_v60 = vadd.f32 %v752_v54, %v749_v58  ;;  %867 = vrot.lane.b32.xlu1 %v2328_v59, %s1970_s18  ;;  %830 = vrot.lane.b32.xlu0 %v2328_v59, %s1971_s20 }
 0x307   : > { %v1737_v61 = vpack.i.bf16 %v2134_v3, %v2330_v60  ;;  %v1732_v62 = vpack.i.bf16 %v2330_v60, %v2328_v59  ;;  %v889_v3 = vld [vmem:[%s2669_s6] sm:$0xff] }
 0x309   : > { %817 = vrot.lane.b32.xlu1 %v2328_v59, %s1972_s8  ;;  %1738 = vrot.lane.b32.xlu0 %v1737_v61, %s1971_s20 }
 0x30d   : > { %1733 = vrot.lane.b32.xlu1 %v1732_v62, %s1968_s13  ;;  %1748 = vrot.lane.b32.xlu0 %v1737_v61, %s1972_s8 }
 0x311   : > { %1743 = vrot.lane.b32.xlu1 %v1737_v61, %s1970_s18  ;;  %1753 = vrot.lane.b32.xlu0 %v1732_v62, %s1969_s17 }
 0x315   : > { %802 = vrot.lane.b32.xlu1 %v1947_v0, %s1973_s14  ;;  %1763 = vrot.lane.b32.xlu0 %v1732_v62, %s1974_s16 }
 0x319   : > { %1758 = vrot.lane.b32.xlu1 %v1732_v62, %s1973_s14  ;;  %770 = vrot.lane.b32.xlu0 %v1947_v0, %s1974_s16 }
 0x31d   : > { %1768 = vrot.lane.b32.xlu1 %v1732_v62, %s1975_s23  ;;  %892 = vperm.xlu0 %1772, %v889_v3  }
 0x321   : > { %856 = vrot.lane.b32.xlu1 %v1947_v0, %s1975_s23  ;;  %1039 = vrot.lane.b32.xlu0 %v1947_v0, %s1953_s9 }
 0x322   : > { %1774 = vset.pattern.permute.xlu0 %v1958_v9 }
 0x325   : > { %948 = vperm.xlu1 %1730, %v889_v3   ;;  %1069 = vrot.lane.b32.xlu0 %v1947_v0, %s1965_s22 }
 0x329   : > { %1773 = vset.pattern.permute.xlu1 %v1958_v9  ;;  %1097 = vrot.lane.b32.xlu0 %v1947_v0, %s1973_s14 }
 0x32a   : > { %954 = vperm.xlu1 %1773, %v889_v3  }
 0x377   : > { %v868_v2 = vpop.permute.xlu1 %867  ;;  %v831_v4 = vpop.permute.xlu0 %830 }
 0x37b   : > { %v818_v5 = vpop.permute.xlu1 %817  ;;  %v1739_v7 = vpop.permute.xlu0 %1738 }
 0x37c   : > { %v1741_v9 = vunpack.i.h.bf16 %v1739_v7  ;;  %v1740_v0 = vunpack.i.l.bf16 %v1739_v7 }
 0x37e   : > { %v838_v27 = vsel %vm836_vm10, %v1740_v0, %v1741_v9  ;;  %v837_v37 = vsel %vm836_vm10, %v831_v4, %v1740_v0  ;;  %vm795_vm10 = vcmask 367616  }
 0x37f   : > { %v1734_v8 = vpop.permute.xlu1 %1733  ;;  %v1749_v10 = vpop.permute.xlu0 %1748 }
 0x380   : > { %v1736_v11 = vunpack.i.h.bf16 %v1734_v8  ;;  %v1735_v12 = vunpack.i.l.bf16 %v1734_v8  ;;  %v1751_v20 = vunpack.i.h.bf16 %v1749_v10  ;;  %v1750_v21 = vunpack.i.l.bf16 %v1749_v10  ;;  %v2423_v8 = vld [vmem:[#allocation2 + $0x18] sm:$0xff] }
 0x381   : > { %1057 = vrot.lane.b32.xlu1 %v2423_v8, %s1951_s29 }
 0x382   : > { %v851_v13 = vsel %vm849_vm0, %v1736_v11, %v848_v63  ;;  %v850_v16 = vsel %vm849_vm0, %v1735_v12, %v1736_v11  ;;  %vm2373_vm0 = vmpackc.low %vm1959_vm8, %vm762_vm12  ;;  %v825_v36 = vsel %vm2690_vm13, %v1750_v21, %v1751_v20  ;;  %v824_v39 = vsel %vm2690_vm13, %v818_v5, %v1750_v21 }
 0x383   : > { %v855_v17 = vsel %vm784_vm3, %v851_v13, 0.0  ;;  %v1744_v18 = vpop.permute.xlu1 %1743  ;;  %v854_v19 = vsel %vm783_vm6, %v850_v16, 0.0  ;;  %v1754_v24 = vpop.permute.xlu0 %1753  ;;  %v1522_v43 = vpack.c.bf16 %v825_v36, %v2330_v60  ;;  %v1525_v48 = vpack.c.bf16 %v824_v39, %v2328_v59  ;;  %vm1524_vm13 = vmpackc.low %vm783_vm6, %vm1959_vm8 }
 0x384   : > { %v1746_v22 = vunpack.i.h.bf16 %v1744_v18  ;;  %v1745_v23 = vunpack.i.l.bf16 %v1744_v18  ;;  %v887_v25 = vpack.c.bf16 %v855_v17, %v855_v17  ;;  %v886_v26 = vpack.c.bf16 %v854_v19, %v854_v19 }
 0x385   : > { %v1756_v41 = vunpack.i.h.bf16 %v1754_v24  ;;  %v1755_v42 = vunpack.i.l.bf16 %v1754_v24  ;;  %1085 = vrot.lane.b32.xlu1 %v2423_v8, %s1964_s21 }
 0x386   : > { %v875_v28 = vsel %vm873_vm11, %v1745_v23, %v1746_v22  ;;  %v874_v30 = vsel %vm873_vm11, %v868_v2, %v1745_v23  ;;  %1514 = vmatprep.subr.msk.bf16.mxu0 %vm491_vm7, %v887_v25  ;;  %v899_v33 = vsel %vm491_vm7, %v886_v26, 0  ;;  %vm1521_vm7 = vmpackc.low %vm784_vm3, %vm1959_vm8  ;;  %vm808_vm11 = vcmask 23552  }
 0x387   : > { %v1516_v31 = vpack.c.bf16 %v875_v28, %v838_v27  ;;  %v803_v32 = vpop.permute.xlu1 %802  ;;  %911 = vmatpush1.bf16.msra.mxu0 %v899_v33  ;;  %v1519_v40 = vpack.c.bf16 %v874_v30, %v837_v37  ;;  %v1764_v44 = vpop.permute.xlu0 %1763  ;;  %v797_v49 = vsel %vm795_vm10, %v1755_v42, %v1756_v41  ;;  %v796_v57 = vsel %vm795_vm10, %v2359_v1, %v1755_v42  ;;  %vm1530_vm8 = vmpackc.low %vm761_vm9, %vm783_vm6  ;;  %v888_v1 = vld [vmem:[#allocation8] sm:$0xf] }
 0x388   : > { %v1766_v6 = vunpack.i.h.bf16 %v1764_v44  ;;  %v1765_v50 = vunpack.i.l.bf16 %v1764_v44  ;;  %v959_v22 = vadd.f32 %v2328_v59, %v2230_v34  ;;  %v960_v25 = vadd.f32 %v2330_v60, %v2232_v35 }
 0x389   : > { %1517 = vmatprep.subr.msk.bf16.mxu0 %vm2373_vm0, %v1516_v31 }
 0x38a   : > { %v778_v62 = vsel %vm776_vm1, %v1765_v50, %v1766_v6 }
 0x38b   : > { %v1759_v45 = vpop.permute.xlu1 %1758  ;;  %1520 = vmatpush1.bf16.msk.msra.mxu0 %vm2388_vm4, %v1519_v40  ;;  %v771_v58 = vpop.permute.xlu0 %770 }
 0x38c   : > { %v1761_v46 = vunpack.i.h.bf16 %v1759_v45  ;;  %v1760_v47 = vunpack.i.l.bf16 %v1759_v45  ;;  %1523 = vmatprep.subr.msk.bf16.mxu0 %vm1521_vm7, %v1522_v43  ;;  %vm862_vm7 = vcmask 392192   ;;  %v777_v4 = vsel %vm776_vm1, %v771_v58, %v1765_v50 }
 0x38d   : > { %vm2716_vm1 = vcmask 1039360  }
 0x38e   : > { %v810_v51 = vsel %vm808_vm11, %v1760_v47, %v1761_v46  ;;  %v809_v52 = vsel %vm808_vm11, %v803_v32, %v1760_v47 }
 0x38f   : > { %v1528_v53 = vpack.c.bf16 %v810_v51, %v797_v49  ;;  %v1769_v54 = vpop.permute.xlu1 %1768  ;;  %1526 = vmatpush1.bf16.msk.msra.mxu0 %vm1524_vm13, %v1525_v48  ;;  %v1531_v61 = vpack.c.bf16 %v809_v52, %v796_v57  ;;  %vm2720_vm13 = vcmp.lt.s32.totalorder %v2163_v15, 15 }
 0x390   : > { %v1771_v55 = vunpack.i.h.bf16 %v1769_v54  ;;  %v1770_v56 = vunpack.i.l.bf16 %v1769_v54 }
 0x391   : > { %1529 = vmatprep.subr.msk.bf16.mxu0 %vm1527_vm15, %v1528_v53  ;;  %vm2717_vm15 = vmmov %vm2716_vm1 }
 0x392   : > { %v864_v3 = vsel %vm862_vm7, %v1770_v56, %v1771_v55 }
 0x393   : > { %v857_v63 = vpop.permute.xlu1 %856  ;;  %v1534_v2 = vpack.c.bf16 %v864_v3, %v778_v62  ;;  %1532 = vmatpush1.bf16.msk.msra.mxu0 %vm1530_vm8, %v1531_v61  ;;  %vm2724_vm8 = vcmp.ge.s32.totalorder %v2163_v15, 2 }
 0x394   : > { %v863_v5 = vsel %vm862_vm7, %v857_v63, %v1770_v56 }
 0x395   : > { %v1537_v7 = vpack.c.bf16 %v863_v5, %v777_v4  ;;  %1535 = vmatprep.subr.msk.bf16.mxu0 %vm2373_vm0, %v1534_v2  ;;  %vm2721_vm0 = vcmp.lt.s32.totalorder %v2161_v14, 15 }
 0x397   : > { %1538 = vmatpush1.bf16.msk.msra.mxu0 %vm2388_vm4, %v1537_v7  ;;  %vm2719_vm4 = vcmp.ge.s32.totalorder %v2161_v14, 1 }
 0x398   : > { %v893_v10 = vpop.permute.xlu0 %892 }
 0x39a   : > { %1539 = vmatmul.mubr.msk.bf16.vlgmr.msra.gmra.mxu0 %vm487_vm14, %v888_v1  ;;  %vm2718_vm14 = vcmp.ge.s32.totalorder %v2163_v15, 1 }
 0x39c   : > { %v1040_v37 = vpop.permute.xlu0 %1039 }
 0x3a0   : > { %v949_v11 = vpop.permute.xlu1 %948  ;;  %v1070_v39 = vpop.permute.xlu0 %1069 }
 0x3a4   : > { %v1098_v41 = vpop.permute.xlu0 %1097 }
 0x3a5   : > { %v955_v18 = vpop.permute.xlu1 %954 }
 0x3f3   : > { %v1058_v38 = vpop.permute.xlu1 %1057 }
 0x3f7   : > { %v1086_v40 = vpop.permute.xlu1 %1085 }
 0x45a   : > { %v938_v12 = vpop.f32.mrf.mxu0 }
 0x45b   : > { %v939_v9 = vadd.f32 %v938_v12, %v893_v10 }
 0x45c   : > { %v940_v0 = vpop.f32.mrf.mxu0 }
 0x45d   : > { %v945_v13 = vmax.f32 %v939_v9, 0.0  ;;  %v941_v16 = vadd.f32 %v940_v0, %v893_v10 }
 0x45e   : > { %v942_v17 = vpop.f32.mrf.mxu0 }
 0x45f   : > { %v951_v19 = vmul.f32 %v949_v11, %v945_v13  ;;  %v946_v20 = vmax.f32 %v941_v16, 0.0 }
 0x460   : > { %v943_v21 = vpop.f32.mrf.mxu0 }
 0x461   : > { %v952_v23 = vmul.f32 %v949_v11, %v946_v20  ;;  %v957_v24 = vadd.f32 %v955_v18, %v951_v19 }
 0x463   : > { %v958_v26 = vadd.f32 %v955_v18, %v952_v23  ;;  %v2433_v27 = vadd.f32 %v959_v22, %v957_v24 }
 0x465   : > { %v2435_v28 = vadd.f32 %v960_v25, %v958_v26  ;;  %v1021_v29 = vsub.f32 0.0, %v2433_v27 }
 0x467   : > { %v1022_v30 = vsub.f32 0.0, %v2435_v28  ;;  %v1023_v31 = vmul.f32 1.442695, %v1021_v29 }
 0x469   : > { %1775 = vpow2.f32 %v1023_v31  ;;  %v1025_v32 = vmul.f32 1.442695, %v1022_v30 }
 0x46b   : > { %1777 = vpow2.f32 %v1025_v32 }
 0x476   : > { %v1776_v33 = vpop.eup %1775 }
 0x477   : > { %v1027_v34 = vadd.f32 1.0, %v1776_v33 }
 0x478   : > { %v1778_v59 = vpop.eup %1777 }
 0x479   : > { %v1028_v36 = vadd.f32 1.0, %v1778_v59  ;;  %1779 = vrcp.f32 %v1027_v34 }
 0x47b   : > { %1781 = vrcp.f32 %v1028_v36 }
 0x486   : > { %v2439_v35 = vpop.eup %1779 }
 0x487   : > { %1041 = vrot.lane.b32.xlu1 %v2439_v35, %s1953_s9 }
 0x488   : > { %v2443_v60 = vpop.eup %1781 }
 0x489   : > { %1043 = vrot.lane.b32.xlu0 %v2443_v60, %s1953_s9  ;;  %s2730_s9 = smov 32  }
 0x48b   : > { %1053 = vrot.lane.b32.xlu1 %v2439_v35, %s1951_s29 }
 0x48d   : > { %1055 = vrot.lane.b32.xlu0 %v2443_v60, %s1951_s29  ;;  %s1976_s29 = smov 64  }
 0x48f   : > { %1071 = vrot.lane.b32.xlu1 %v2439_v35, %s1965_s22 }
 0x491   : > { %1073 = vrot.lane.b32.xlu0 %v2443_v60, %s1965_s22  ;;  %s1546_s22 = sshll.u32 %s2039_s28, 8  ;;  %s1977_s28 = smov [#allocation9]  }
 0x492   : > { %s1878_s20 = sshll.u32 %s1977_s28, 4  ;;  %s1879_s20 = int_to_ptr.vmem [resolvable:$false] %s1878_s20 }
 0x493   : > { %1081 = vrot.lane.b32.xlu1 %v2439_v35, %s1964_s21 }
 0x495   : > { %1083 = vrot.lane.b32.xlu0 %v2443_v60, %s1964_s21 }
 0x497   : > { %1099 = vrot.lane.b32.xlu1 %v2439_v35, %s1973_s14 }
 0x499   : > { %1101 = vrot.lane.b32.xlu0 %v2443_v60, %s1973_s14 }
 0x49b   : > { %1109 = vrot.lane.b32.xlu1 %v2439_v35, %s1972_s8 }
 0x49d   : > { %1111 = vrot.lane.b32.xlu0 %v2443_v60, %s1972_s8 }
 0x49f   : > { %1113 = vrot.lane.b32.xlu1 %v2423_v8, %s1972_s8  ;;  %s1357_s8 = scalar_lea.hbm %s2670_s7, %s1546_s22 }
 0x4a1   : > { %1178 = vrot.lane.b32.xlu0 %v2423_v8, %s1962_s19 }
 0x4a3   : > { %1247 = vrot.lane.b32.xlu1 %v2423_v8, %s1962_s19 }
 0x4a5   : > { %1138 = vrot.lane.b32.xlu0 %v2423_v8, %s1962_s19 }
 0x4a7   : > { %1207 = vrot.lane.b32.xlu1 %v2423_v8, %s1976_s29 }
 0x4a9   : > { %1276 = vrot.lane.b32.xlu0 %v2423_v8, %s1976_s29 }
 0x4f9   : > { %v1042_v42 = vpop.permute.xlu1 %1041 }
 0x4fa   : > { %v1045_v45 = vsel %vm400_vm2, %v1040_v37, %v1042_v42 }
 0x4fb   : > { %v1044_v43 = vpop.permute.xlu0 %1043  ;;  %v1049_v6 = vsel %vm2718_vm14, %v1045_v45, 0.0  ;;  %vm2728_vm14 = vcmask 1022976  }
 0x4fc   : > { %v1046_v46 = vsel %vm400_vm2, %v1042_v42, %v1044_v43  ;;  %vm2722_vm2 = vcmask 1031168  }
 0x4fd   : > { %v1054_v44 = vpop.permute.xlu1 %1053  ;;  %v1050_v50 = vsel %vm2719_vm4, %v1046_v46, 0.0  ;;  %vm2723_vm10 = vmmov %vm2722_vm2 }
 0x4fe   : > { %vm2729_vm4 = vmmov %vm2728_vm14 }
 0x4ff   : > { %v1056_v47 = vpop.permute.xlu0 %1055 }
 0x500   : > { %v1059_v48 = vsel %vm2716_vm1, %v1054_v44, %v1056_v47  ;;  %v1060_v49 = vsel %vm2717_vm15, %v1056_v47, %v1058_v38  ;;  %vm2725_vm1 = vcmp.ge.s32.totalorder %v2161_v14, 2  ;;  %vm2726_vm15 = vcmp.lt.s32.totalorder %v2163_v15, 14 }
 0x501   : > { %v1063_v51 = vsel %vm2720_vm13, %v1059_v48, 0.0  ;;  %v1064_v52 = vsel %vm2721_vm0, %v1060_v49, 0.0  ;;  %v1072_v53 = vpop.permute.xlu1 %1071 }
 0x502   : > { %v1065_v54 = vmax.f32 %v1049_v6, %v1063_v51  ;;  %v1066_v55 = vmax.f32 %v1050_v50, %v1064_v52  ;;  %v1075_v62 = vsel %vm605_vm5, %v1070_v39, %v1072_v53  ;;  %v1795_v39 = vld [vmem:[#allocation2] sm:$0xff] }
 0x503   : > { %v1074_v56 = vpop.permute.xlu0 %1073  ;;  %v1079_v5 = vsel %vm2724_vm8, %v1075_v62, 0.0  ;;  %vm2741_vm8 = vcmask 261120  }
 0x504   : > { %v2492_v57 = vmax.f32 %v2439_v35, %v1065_v54  ;;  %v2495_v58 = vmax.f32 %v2443_v60, %v1066_v55  ;;  %v1076_v3 = vsel %vm605_vm5, %v1072_v53, %v1074_v56  ;;  %vm2727_vm5 = vcmp.lt.s32.totalorder %v2161_v14, 14 }
 0x505   : > { %v1082_v61 = vpop.permute.xlu1 %1081  ;;  %v1080_v7 = vsel %vm2725_vm1, %v1076_v3, 0.0 }
 0x506   : > { %1136 = vrot.lane.b32.xlu1 %v2495_v58, %s1962_s19  ;;  %1134 = vrot.lane.b32.xlu0 %v2492_v57, %s1962_s19 }
 0x507   : > { %v1084_v63 = vpop.permute.xlu0 %1083 }
 0x508   : > { %v1087_v2 = vsel %vm2722_vm2, %v1082_v61, %v1084_v63  ;;  %v1088_v4 = vsel %vm2723_vm10, %v1084_v63, %v1086_v40 }
 0x509   : > { %v1091_v1 = vsel %vm2726_vm15, %v1087_v2, 0.0  ;;  %v1092_v10 = vsel %vm2727_vm5, %v1088_v4, 0.0  ;;  %v1100_v11 = vpop.permute.xlu1 %1099  ;;  %vm2743_vm15 = vmmov %vm2741_vm8  ;;  %vm2744_vm5 = vcmask 130048  }
 0x50a   : > { %v1093_v12 = vmax.f32 %v1079_v5, %v1091_v1  ;;  %v1094_v9 = vmax.f32 %v1080_v7, %v1092_v10  ;;  %v1103_v18 = vsel %vm808_vm11, %v1098_v41, %v1100_v11 }
 0x50b   : > { %v1102_v0 = vpop.permute.xlu0 %1101  ;;  %v1107_v22 = vsel %vm761_vm9, %v1103_v18, 0.0  ;;  %vm2731_vm9 = vcmask 785408  }
 0x50c   : > { %v2514_v13 = vmax.f32 %v2492_v57, %v1093_v12  ;;  %v2517_v16 = vmax.f32 %v2495_v58, %v1094_v9  ;;  %v1104_v20 = vsel %vm808_vm11, %v1100_v11, %v1102_v0  ;;  %vm2736_vm11 = vcmask 523264  }
 0x50d   : > { %v1110_v17 = vpop.permute.xlu1 %1109  ;;  %v1108_v29 = vsel %vm762_vm12, %v1104_v20, 0.0  ;;  %vm2737_vm13 = vmmov %vm2736_vm11 }
 0x50e   : > { %1176 = vrot.lane.b32.xlu1 %v2517_v16, %s1962_s19  ;;  %1174 = vrot.lane.b32.xlu0 %v2514_v13, %s1962_s19  ;;  %vm2739_vm2 = vmmov %vm2736_vm11 }
 0x50f   : > { %v1112_v19 = vpop.permute.xlu0 %1111  ;;  %vm2742_vm1 = vmmov %vm2739_vm2 }
 0x510   : > { %v1115_v21 = vsel %vm2728_vm14, %v1110_v17, %v1112_v19  ;;  %vm2745_vm14 = vmmov %vm2744_vm5 }
 0x511   : > { %v1119_v23 = vsel %vm783_vm6, %v1115_v21, 0.0  ;;  %v1114_v24 = vpop.permute.xlu1 %1113 }
 0x512   : > { %v1121_v25 = vmax.f32 %v1107_v22, %v1119_v23  ;;  %v1116_v26 = vsel %vm2729_vm4, %v1112_v19, %v1114_v24  ;;  %1203 = vrot.lane.b32.xlu1 %v2514_v13, %s1976_s29  ;;  %1205 = vrot.lane.b32.xlu0 %v2517_v16, %s1976_s29  ;;  %vm2746_vm4 = vmmov %vm2744_vm5 }
 0x513   : > { %v1120_v30 = vsel %vm784_vm3, %v1116_v26, 0.0  ;;  %v1179_v14 = vpop.permute.xlu0 %1178  ;;  %vm2732_vm3 = vmmov %vm2731_vm9  ;;  %v969_v26 = vrot.slane %v2435_v28, 4 }
 0x514   : > { %v2540_v31 = vmax.f32 %v2514_v13, %v1121_v25  ;;  %v1122_v15 = vmax.f32 %v1108_v29, %v1120_v30  ;;  %vm2734_vm6 = vmmov %vm2732_vm3  ;;  %v963_v25 = vrot.slane %v2433_v27, 4 }
 0x515   : > { %v1248_v34 = vpop.permute.xlu1 %1247  ;;  %vm2735_vm12 = vmmov %vm2732_vm3  ;;  %v970_v30 = vmax.f32 %v2435_v28, %v969_v26 }
 0x516   : > { %v2543_v32 = vmax.f32 %v2517_v16, %v1122_v15  ;;  %1243 = vrot.lane.b32.xlu1 %v2540_v31, %s1962_s19  ;;  %vm2738_vm0 = vmmov %vm2732_vm3  ;;  %v964_v29 = vmax.f32 %v2433_v27, %v963_v25 }
 0x517   : > { %v1139_v33 = vpop.permute.xlu0 %1138  ;;  %vm2740_vm10 = vmmov %vm2738_vm0 }
 0x518   : > { %1245 = vrot.lane.b32.xlu0 %v2543_v32, %s1962_s19  ;;  %v965_v15 = vrot.slane %v964_v29, 2  ;;  %s307_s19 = sand.u32 1, %s1934_s25  }
 0x519   : > { %v1208_v36 = vpop.permute.xlu1 %1207  ;;  %s1459_s21 = sshll.u32 %s307_s19, 4  ;;  %s1345_s14 = scalar_lea.sflag [#allocation5], %s307_s19 }
 0x51a   : > { %1274 = vrot.lane.b32.xlu1 %v2543_v32, %s1976_s29 }
 0x51b   : > { %v1277_v59 = vpop.permute.xlu0 %1276 }
 0x51c   : > { %1272 = vrot.lane.b32.xlu0 %v2540_v31, %s1976_s29  ;;  %s1880_s29 = scalar_lea.vmem %s1879_s20, 512 }
 0x51e   : > { %1301 = vrot.lane.b32.xlu1 %v2540_v31, %s2730_s9 }
 0x520   : > { %1303 = vrot.lane.b32.xlu0 %v2543_v32, %s2730_s9 }
 0x522   : > { %1305 = vrot.lane.b32.xlu1 %v2423_v8, %s2730_s9 }
 0x578   : > { %v1135_v37 = vpop.permute.xlu0 %1134  ;;  %v1137_v38 = vpop.permute.xlu1 %1136 }
 0x579   : > { %v1145_v40 = vmax.f32 %v1795_v39, %v1135_v37  ;;  %v1140_v41 = vsel %vm2731_vm9, %v1135_v37, %v1137_v38  ;;  %v1141_v42 = vsel %vm2732_vm3, %v1137_v38, %v1139_v33  ;;  %v966_v33 = vmax.f32 %v964_v29, %v965_v15  ;;  %vm2747_vm9 = vmmov %vm2746_vm4 }
 0x57a   : > { %v1146_v43 = vmax.f32 %v2492_v57, %v1140_v41  ;;  %v1147_v8 = vmax.f32 %v2495_v58, %v1141_v42  ;;  %vm2748_vm3 = vmmov %vm2741_vm8 }
 0x57b   : > { %1151 = vrot.lane.b32.xlu0 %v1145_v40, %s2733_s15 }
 0x57c   : > { %1153 = vrot.lane.b32.xlu1 %v1146_v43, %s2733_s15 }
 0x57f   : > { %1155 = vrot.lane.b32.xlu0 %v1147_v8, %s2733_s15 }
 0x580   : > { %v1175_v44 = vpop.permute.xlu0 %1174  ;;  %v1177_v45 = vpop.permute.xlu1 %1176 }
 0x581   : > { %v1185_v46 = vmax.f32 %v1795_v39, %v1175_v44  ;;  %v1181_v47 = vsel %vm2734_vm6, %v1177_v45, %v1179_v14  ;;  %v1180_v51 = vsel %vm2735_vm12, %v1175_v44, %v1177_v45  ;;  %v971_v14 = vrot.slane %v970_v30, 2  ;;  %vm2749_vm6 = vmmov %vm2748_vm3 }
 0x582   : > { %v1187_v6 = vmax.f32 %v2517_v16, %v1181_v47  ;;  %v1186_v54 = vmax.f32 %v2514_v13, %v1180_v51  ;;  %vm2750_vm12 = vmmov %vm2746_vm4 }
 0x583   : > { %1191 = vrot.lane.b32.xlu0 %v1185_v46, %s2733_s15 }
 0x584   : > { %v1206_v48 = vpop.permute.xlu0 %1205  ;;  %v1204_v49 = vpop.permute.xlu1 %1203 }
 0x585   : > { %v1214_v50 = vmax.f32 %v1795_v39, %v1204_v49  ;;  %v1209_v52 = vsel %vm2736_vm11, %v1204_v49, %v1206_v48  ;;  %v1210_v56 = vsel %vm2737_vm13, %v1206_v48, %v1208_v36  ;;  %vm2751_vm11 = vmmov %vm2746_vm4 }
 0x586   : > { %v1215_v55 = vmax.f32 %v2514_v13, %v1209_v52  ;;  %v1216_v3 = vmax.f32 %v2517_v16, %v1210_v56  ;;  %vm2752_vm13 = vmmov %vm2748_vm3 }
 0x587   : > { %1195 = vrot.lane.b32.xlu0 %v1187_v6, %s2733_s15  ;;  %1220 = vrot.lane.b32.xlu1 %v1214_v50, %s2730_s9 }
 0x588   : > { %v1244_v53 = vpop.permute.xlu1 %1243 }
 0x589   : > { %v1254_v5 = vmax.f32 %v1795_v39, %v1244_v53 }
 0x58a   : > { %v1246_v61 = vpop.permute.xlu0 %1245 }
 0x58b   : > { %1193 = vrot.lane.b32.xlu1 %v1186_v54, %s2733_s15  ;;  %1222 = vrot.lane.b32.xlu0 %v1215_v55, %s2730_s9  ;;  %v1249_v4 = vsel %vm2738_vm0, %v1244_v53, %v1246_v61  ;;  %v1250_v9 = vsel %vm2740_vm10, %v1246_v61, %v1248_v34  ;;  %v972_v34 = vmax.f32 %v970_v30, %v971_v14  ;;  %vm2753_vm0 = vmmov %vm2748_vm3 }
 0x58c   : > { %v1275_v62 = vpop.permute.xlu1 %1274  ;;  %v1255_v1 = vmax.f32 %v2540_v31, %v1249_v4  ;;  %v1256_v18 = vmax.f32 %v2543_v32, %v1250_v9 }
 0x58d   : > { %v1279_v10 = vsel %vm2739_vm2, %v1275_v62, %v1277_v59  ;;  %v967_v59 = vrot.slane %v966_v33, 1  ;;  %v973_v36 = vrot.slane %v972_v34, 1 }
 0x58e   : > { %v1273_v63 = vpop.permute.xlu0 %1272  ;;  %v1285_v0 = vmax.f32 %v2543_v32, %v1279_v10 }
 0x58f   : > { %v1283_v2 = vmax.f32 %v1795_v39, %v1273_v63  ;;  %1224 = vrot.lane.b32.xlu1 %v1216_v3, %s2730_s9  ;;  %v1278_v19 = vsel %vm2742_vm1, %v1273_v63, %v1275_v62  ;;  %v968_v37 = vmax.f32 %v966_v33, %v967_v59  ;;  %v974_v38 = vmax.f32 %v972_v34, %v973_v36 }
 0x590   : > { %v1302_v7 = vpop.permute.xlu1 %1301  ;;  %v1284_v22 = vmax.f32 %v2540_v31, %v1278_v19 }
 0x591   : > { %1289 = vrot.lane.b32.xlu0 %v1283_v2, %s2730_s9  ;;  %v1312_v11 = vmax.f32 %v1795_v39, %v1302_v7  ;;  %v975_v39 = vsub.f32 %v2433_v27, %v968_v37  ;;  %v976_v40 = vsub.f32 %v2435_v28, %v974_v38 }
 0x592   : > { %v1304_v12 = vpop.permute.xlu0 %1303 }
 0x593   : > { %1260 = vrot.lane.b32.xlu1 %v1254_v5, %s2733_s15  ;;  %v1307_v17 = vsel %vm2741_vm8, %v1302_v7, %v1304_v12  ;;  %v977_v41 = vmul.f32 1.442695, %v975_v39  ;;  %v979_v42 = vmul.f32 1.442695, %v976_v40 }
 0x594   : > { %v1313_v20 = vmax.f32 %v2540_v31, %v1307_v17  ;;  %v1306_v21 = vpop.permute.xlu1 %1305 }
 0x595   : > { %1262 = vrot.lane.b32.xlu0 %v1255_v1, %s2733_s15  ;;  %v1308_v23 = vsel %vm2743_vm15, %v1304_v12, %v1306_v21  ;;  %1783 = vpow2.f32 %v977_v41 }
 0x596   : > { %v1314_v24 = vmax.f32 %v2543_v32, %v1308_v23  ;;  %1785 = vpow2.f32 %v979_v42 }
 0x597   : > { %1318 = vrot.lane.b32.xlu1 %v1312_v11, %s1975_s23 }
 0x599   : > { %1293 = vrot.lane.b32.xlu0 %v1285_v0, %s2730_s9 }
 0x59b   : > { %1264 = vrot.lane.b32.xlu1 %v1256_v18, %s2733_s15 }
 0x59d   : > { %1320 = vrot.lane.b32.xlu0 %v1313_v20, %s1975_s23 }
 0x59f   : > { %1291 = vrot.lane.b32.xlu1 %v1284_v22, %s2730_s9 }
 0x5a2   : > { %v1784_v43 = vpop.eup %1783 }
 0x5a3   : > { %1322 = vrot.lane.b32.xlu1 %v1314_v24, %s1975_s23  ;;  %v1786_v8 = vpop.eup %1785  ;;  %v981_v44 = vrot.slane %v1784_v43, 4  ;;  %v1001_v54 = vmul.f32 %v1784_v43, %v975_v39  ;;  %s309_s23 = scalar_lea.vmem [#allocation9], %s1459_s21 }
 0x5a4   : > { %v987_v45 = vrot.slane %v1786_v8, 4  ;;  %v1002_v55 = vmul.f32 %v1786_v8, %v976_v40  ;;  %s1359_s13 = sshll.u32 %s309_s23, 4  ;;  %s1360_s13 = int_to_ptr.vmem [resolvable:$true] %s1359_s13 }
 0x5a5   : > { %v982_v47 = vadd.f32 %v1784_v43, %v981_v44  ;;  %v1003_v63 = vrot.slane %v1001_v54, 4  ;;  %s1874_s16 = scalar_lea.vmem %s1360_s13, 256  ;;  %p1881_p4 = scmp.lt.s32.totalorder %s1360_s13, %s1879_s20 }
 0x5a6   : > { %v988_v48 = vadd.f32 %v1786_v8, %v987_v45  ;;  %v1009_v2 = vrot.slane %v1002_v55, 4  ;;  %p1875_p12 = scmp.ne.s32.totalorder %s1360_s13, %s1874_s16  ;;  %p1882_p5 = scmp.lt.s32.totalorder %s1880_s29, %s1874_s16 }
 0x5a7   : > { %v983_v6 = vrot.slane %v982_v47, 2  ;;  %v1004_v1 = vadd.f32 %v1003_v63, %v1001_v54 }
 0x5a8   : > { %v989_v50 = vrot.slane %v988_v48, 2  ;;  %v1010_v12 = vadd.f32 %v1009_v2, %v1002_v55  ;;  %p1876_p9 = pnand %p1875_p12, %p2754_p2  ;;  %p1883_p6 = por %p1882_p5, %p1881_p4 }
 0x5a9   : > { %v984_v53 = vadd.f32 %v983_v6, %v982_v47  ;;  %v1005_v17 = vrot.slane %v1004_v1, 2 }
 0x5aa   : > { %v990_v56 = vadd.f32 %v989_v50, %v988_v48  ;;  %v1011_v18 = vrot.slane %v1010_v12, 2  ;;  %p1877_p3 = pneg %p1876_p9 }
 0x5ab   : > { %v985_v3 = vrot.slane %v984_v53, 1  ;;  %v1006_v21 = vadd.f32 %v1005_v17, %v1004_v1 }
 0x5ac   : > { %v991_v4 = vrot.slane %v990_v56, 1  ;;  %v1012_v22 = vadd.f32 %v1011_v18, %v1010_v12  ;;  %p1884_p10 = pnand %p1883_p6, %p1877_p3 }
 0x5ad   : > { %v986_v7 = vadd.f32 %v985_v3, %v984_v53  ;;  %v1007_v26 = vrot.slane %v1006_v21, 1 }
 0x5ae   : > { %v992_v11 = vadd.f32 %v991_v4, %v990_v56  ;;  %v1013_v29 = vrot.slane %v1012_v22, 1 }
 0x5af   : > { %1787 = vrcp.f32 %v986_v7  ;;  %v1008_v36 = vadd.f32 %v1007_v26, %v1006_v21 }
 0x5b0   : > { %1789 = vlog2.f32 %v986_v7  ;;  %v1014_v37 = vadd.f32 %v1013_v29, %v1012_v22 }
 0x5b1   : > { %1791 = vrcp.f32 %v992_v11 }
 0x5b2   : > { %1793 = vlog2.f32 %v992_v11 }
 0x5bc   : > { %v1788_v14 = vpop.eup %1787 }
 0x5bd   : > { %v1790_v59 = vpop.eup %1789  ;;  %v1015_v48 = vmul.f32 %v1788_v14, %v1008_v36 }
 0x5be   : > { %v1792_v38 = vpop.eup %1791  ;;  %v998_v50 = vmul.f32 0.6931472, %v1790_v59 }
 0x5bf   : > { %v1794_v43 = vpop.eup %1793 }
 0x5ed   : > { %v1152_v46 = vpop.permute.xlu0 %1151 }
 0x5ee   : > { %v1154_v51 = vpop.permute.xlu1 %1153 }
 0x5ef   : > { %v1157_v39 = vsel %vm2747_vm9, %v1152_v46, %v1154_v51 }
 0x5f0   : > { %v1161_v53 = vmax.f32 %v2492_v57, %v1157_v39 }
 0x5f1   : > { %v1156_v49 = vpop.permute.xlu0 %1155 }
 0x5f2   : > { %v1158_v6 = vsel %vm2751_vm11, %v1154_v51, %v1156_v49 }
 0x5f5   : > { %v1192_v52 = vpop.permute.xlu0 %1191 }
 0x5f9   : > { %v1196_v61 = vpop.permute.xlu0 %1195  ;;  %v1221_v62 = vpop.permute.xlu1 %1220 }
 0x5fd   : > { %v1194_v5 = vpop.permute.xlu1 %1193  ;;  %v1223_v10 = vpop.permute.xlu0 %1222 }
 0x5fe   : > { %v1197_v24 = vsel %vm2744_vm5, %v1192_v52, %v1194_v5  ;;  %v1198_v33 = vsel %vm2745_vm14, %v1194_v5, %v1196_v61  ;;  %v1226_v40 = vsel %vm2748_vm3, %v1221_v62, %v1223_v10  ;;  %v1016_v61 = vmul.f32 %v1792_v38, %v1014_v37 }
 0x5ff   : > { %v1201_v30 = vmax.f32 %v2514_v13, %v1197_v24  ;;  %v1202_v13 = vmax.f32 %v2517_v16, %v1198_v33  ;;  %v1162_v62 = vmax.f32 %v2495_v58, %v1158_v6  ;;  %v1017_v5 = vsub.f32 %v998_v50, %v1015_v48 }
 0x601   : > { %v1225_v9 = vpop.permute.xlu1 %1224  ;;  %v1230_v8 = vmax.f32 %v1201_v30, %v1226_v40  ;;  %v1019_v11 = vmul.f32 0.48089835, %v1017_v5 }
 0x602   : > { %v1227_v41 = vsel %vm2749_vm6, %v1223_v10, %v1225_v9 }
 0x603   : > { %v1290_v0 = vpop.permute.xlu0 %1289  ;;  %v1231_v54 = vmax.f32 %v1202_v13, %v1227_v41  ;;  %v1232_v3 = vadd.f32 %v1230_v8, %v1161_v53 }
 0x605   : > { %v1261_v19 = vpop.permute.xlu1 %1260  ;;  %v1233_v4 = vadd.f32 %v1231_v54, %v1162_v62 }
 0x607   : > { %v1263_v20 = vpop.permute.xlu0 %1262 }
 0x608   : > { %v1266_v34 = vsel %vm2746_vm4, %v1261_v19, %v1263_v20 }
 0x609   : > { %v1319_v23 = vpop.permute.xlu1 %1318  ;;  %v1270_v44 = vmax.f32 %v2540_v31, %v1266_v34  ;;  %v1000_v31 = vmul.f32 0.6931472, %v1794_v43 }
 0x60b   : > { %v1294_v25 = vpop.permute.xlu0 %1293  ;;  %v1018_v1 = vsub.f32 %v1000_v31, %v1016_v61 }
 0x60d   : > { %v1265_v15 = vpop.permute.xlu1 %1264 }
 0x60e   : > { %v1267_v42 = vsel %vm2750_vm12, %v1263_v20, %v1265_v15 }
 0x60f   : > { %v1321_v45 = vpop.permute.xlu0 %1320  ;;  %v1271_v55 = vmax.f32 %v2543_v32, %v1267_v42 }
 0x610   : > { %v1324_v56 = vsel %vm862_vm7, %v1319_v23, %v1321_v45 }
 0x611   : > { %v1292_v47 = vpop.permute.xlu1 %1291 }
 0x612   : > { %v1295_v46 = vsel %vm2752_vm13, %v1290_v0, %v1292_v47  ;;  %v1296_v52 = vsel %vm2753_vm0, %v1292_v47, %v1294_v25  ;;  %v1020_v0 = vmul.f32 0.48089835, %v1018_v1 }
 0x613   : > { %v1299_v16 = vmax.f32 %v1270_v44, %v1295_v46  ;;  %v1300_v49 = vmax.f32 %v1271_v55, %v1296_v52 }
 0x615   : > { %v1328_v51 = vmax.f32 %v1299_v16, %v1324_v56  ;;  %v1323_v63 = vpop.permute.xlu1 %1322 }
 0x616   : > { %v1325_v2 = vsel %vm862_vm7, %v1321_v45, %v1323_v63 }
 0x617   : > { %v1330_v57 = vadd.f32 %v1328_v51, %v1232_v3  ;;  %v1329_v7 = vmax.f32 %v1300_v49, %v1325_v2 }
 0x619   : > { %v1332_v32 = vmul.f32 0.33333334, %v1330_v57  ;;  %v1331_v10 = vadd.f32 %v1329_v7, %v1233_v4 }
 0x61b   : > { %v1334_v12 = vmul.f32 %v2439_v35, %v1332_v32  ;;  %v1333_v58 = vmul.f32 0.33333334, %v1331_v10 }
 0x61d   : > { %v1336_v9 = vadd.f32 %v1334_v12, %v1019_v11  ;;  %v1335_v17 = vmul.f32 %v2443_v60, %v1333_v58 }
 0x61f   : > { %v1338_v18 = vadd.f32 1.0, %v1336_v9  ;;  %v1337_v19 = vadd.f32 %v1335_v17, %v1020_v0 }
 0x621   : > { %v1339_v20 = vadd.f32 1.0, %v1337_v19  ;;  %v1340_v21 = vmul.f32 %v1338_v18, %v2433_v27 }
 0x623   : > { %v1341_v22 = vmul.f32 %v1339_v20, %v2435_v28  ;;  %1342 = vst [vmem:[%s309_s23] sm:$0xff] %v1340_v21 }
 0x625   : > { %1343 = vst [vmem:[%s309_s23 + $0x8] sm:$0xff] %v1341_v22 }
 0x626   : > { %1887 = shalt.err (!%p1884_p10)
}
 0x627   : > { %s1888_s9 = scalar_lea.hbm %s1357_s8, 256  ;;  %s1892_s21 = scalar_lea.hbm %s2670_s7, 512 }
 0x628   : > { %p1889_p7 = scmp.ne.s32.totalorder %s1357_s8, %s1888_s9  ;;  %p1893_p11 = scmp.lt.s32.totalorder %s1357_s8, %s2670_s7 }
 0x629   : > { %p1894_p0 = scmp.lt.s32.totalorder %s1892_s21, %s1888_s9 }
 0x62a   : > { %p1890_p8 = pnand %p1889_p7, %p2754_p2 }
 0x62b   : > { %p1895_p1 = por %p1894_p0, %p1893_p11 }
 0x62c   : > { %p1891_p13 = pneg %p1890_p8 }
 0x62e   : > { %p1896_p12 = pnand %p1895_p1, %p1891_p13 }
 0x630   : > { %1899 = shalt.err (!%p1896_p12)
}
 0x631   : > { %1559 = dma.vmem_to_hbm [thread:$0]  (%p2754_p2), %s1360_s13, 256, %s1357_s8, %s1345_s14  }
 0x632 PF: > { %p1581_p9 = scmp.ge.s32.totalorder %s1942_s27, 2  ;;  %s1371_s17 = sand.u32 1, %s1930_s24  }
 0x633   : > { %p2755_p3 = scmp.ne.s32.totalorder %s2694_s12, 0  ;;  %s1372_s18 = scalar_lea.sflag [#allocation5], %s1371_s17 }
 0x635   : > { %p1572_p4 = pnand %p1581_p9, %p2755_p3 }
 0x637   : > { %p1573_p5 = pneg %p1572_p4 }
 0x639   : > { %1925 = dma.done.wait (%p1573_p5), %s1372_s18, 256  }
 0x63a   : > { %1927 = vsyncadd (%p1573_p5), %s1372_s18, 4294967040  ;;  %p19_p6 = scmp.ge.s32.totalorder %s2043_s30, 4   ;;  %s2756_s24 = smov %s1934_s25 }
 0x63b   : > { %s2757_s25 = smov %s1938_s26  ;;  %s2758_s26 = smov %s2054_s10 }
 0x63c   : > { %s2759_s27 = smov %s2043_s30  ;;  %21 = sbr.rel (!%p19_p6) target bundleno = 5 (0x5), region = 96 }
 0x641   :  { %1377 = vsyncpa [#allocation4], 1 }
 0x642   :  { %1379 = vsyncpa [#allocation4 + $0x1], 1 }
 0x643   :  { %1380 = vsyncpa [#allocation7], 1 }
 0x644   :  { %1381 = vsyncpa [#allocation5], 1 }
 0x645   :  { %1383 = vsyncpa [#allocation5 + $0x1], 1 }

</bundles_post_ra>
